<compile_context>
chip_gen: v7x
topology: tpu7x:2x2x1
jax: 0.10.0
libtpu: 0.0.40
codegen_flags: <defaults>
</compile_context>

<pallas_src>
import jax
import jax.numpy as jnp
from jax.experimental import pallas as pl
from jax.experimental.pallas import tpu as pltpu


# -----------------------------------------------------------------------------
# Fused kernel: one (image b, spatial tile t) grid step
# -----------------------------------------------------------------------------
def twostage_vrd_kernel(patches_ref, pool_ref, conv_w_ref, fc1_w_ref, hw_ref,
                        score_w_ref, sel_ref, mask_ref, bias_ref,
                        roi_ref, rel_ref, pooled_acc):
    # patches: (1, T, KCpad) bf16   im2col tile (normalization folded into conv_w)
    # pool   : (R, T)        bf16   0/1 ROI pooling tile pre-scaled by 1/area
    # conv_w : (KCpad, Cf)   bf16   fc1_w: (Cf, Hd) bf16
    # hw     : (Hd, 256)     bf16   [cls|box|0.. | rel_ws | rel_wo | 0..]
    # score_w: (Cf, 128)     bf16   folded RPN score weight (one nonzero lane)
    # sel    : (128, 256)    bf16   constant subject/object expansion matrix
    # mask   : (R, R*P)      f32    mask[x, j*P+p] = (x == j)
    # bias   : (8, 128)      f32    packed biases (see wrapper)
    cf = conv_w_ref.shape[1]
    hd = fc1_w_ref.shape[1]
    L = bias_ref.shape[1]                  # 128
    rp = mask_ref.shape[1]                 # R * P

    t = pl.program_id(1)
    last_t = pl.num_programs(1) - 1

    # ---- init the pooled-feature accumulator on the first spatial tile ---------
    @pl.when(t == 0)
    def _():
        pooled_acc[...] = jnp.zeros_like(pooled_acc)

    # ---- backbone 3x3 conv (normalization folded, +ReLU) + ROI-pool accumulate -
    conv_b = bias_ref[0:1, :cf]                                          # (1, Cf) f32
    feats = jnp.maximum(
        jnp.dot(patches_ref[0], conv_w_ref[...],
                preferred_element_type=jnp.float32) + conv_b, 0.0)       # (T, Cf) f32
    pooled_acc[...] += jnp.dot(pool_ref[...], feats.astype(jnp.bfloat16),
                               preferred_element_type=jnp.float32)       # (R, Cf) f32

    # ---- last spatial tile: folded-RPN score + box head + relation head --------
    @pl.when(t == last_t)
    def _():
        fc1_b = bias_ref[1:2, :hd]        # (1, Hd)
        head_b = bias_ref[2:3, :]         # (1, 128) = [cls_b | box_b | score_b | 0...]
        rel_b = bias_ref[3:4, :rp]        # (1, R*P)  rel bias pre-tiled per object slot

        pooled_bf = pooled_acc[...].astype(jnp.bfloat16)                 # (R, Cf)
        hid = jnp.maximum(
            jnp.dot(pooled_bf, fc1_w_ref[...],
                    preferred_element_type=jnp.float32) + fc1_b, 0.0)    # (R, Hd) f32

        # One fused GEMM for the cls|box head and the P-wide subj/obj projections.
        big = jnp.dot(hid.astype(jnp.bfloat16), hw_ref[...],
                      preferred_element_type=jnp.float32)                # (R, 2L)
        # Folded RPN: score = pooled @ mean_a(rpn_w), written directly into its lane.
        score = jnp.dot(pooled_bf, score_w_ref[...],
                        preferred_element_type=jnp.float32)              # (R, L)
        roi_ref[...] = (big[:, :L] + score + head_b)[None]               # (1, R, 128)

        # Expand the P-wide subject/object vectors to the lane-dense (R, R*P) layout
        # with a constant selection matmul + one masked sublane reduce (no R-fold
        # baked into the learned relation weights).
        exp = jnp.dot(big[:, L:].astype(jnp.bfloat16), sel_ref[...],
                      preferred_element_type=jnp.float32)                # (R, 2L)
        subj_part = exp[:, :rp]                           # [i, j*P+p] = subj[i, p]
        obj_flat = jnp.sum(exp[:, L:L + rp] * mask_ref[...],
                           axis=0, keepdims=True)         # [0, j*P+p] = obj[j, p]
        rel_ref[...] = (subj_part + obj_flat + rel_b)[None]              # (1, R, R*P)


# -----------------------------------------------------------------------------
# Wrapper
# -----------------------------------------------------------------------------
class TwoStageVRDPallas:
    LANES = 128

    def __init__(self, params, *, H, W, C, Cf, A, G, Hd, NCLS, P, hw_tile=128):
        self.H, self.W, self.C = H, W, C
        self.Cf, self.A, self.G = Cf, A, G
        self.Hd, self.NCLS, self.P = Hd, NCLS, P
        self.R = R = G * G
        self.RP = RP = R * P
        L = self.LANES
        HW = H * W
        # TODO(synk): for RP > 128 / Cf,Hd > 128 the single-tile lane packing below needs an
        # extra grid axis over the relation / feature lanes.
        assert RP <= L and NCLS + 5 <= L and Cf <= L and Hd <= L and 2 * P <= L

        # Spatial tile size (pixels per grid step).  Lane rule: the (R, T) pooling block's
        # last dim must be a multiple of 128 or the full HW extent.
        if hw_tile >= HW:
            hw_tile = HW
        assert HW % hw_tile == 0
        assert hw_tile == HW or hw_tile % 128 == 0
        self.hw_tile = hw_tile
        # TODO(synk): on v7x (2 TensorCores) the HW axis could be split across cores with
        # per-core partial pooled sums + a cross-core reduce; here B is the parallel axis.

        # im2col K padded for aligned bf16 MXU packing (27 -> 32 for C=3).
        self.KC = 9 * C
        self.KCpad = KCpad = max(16, -(-self.KC // 16) * 16)

        # preprocess_image folded into the conv: w' = w / std, b' = b - sum(w * mean / std),
        # and the 1px halo is pixel_mean-valued raw pixels (== 0 after folded normalization).
        self.pixel_mean_nhwc = params["pixel_mean"].astype(jnp.float32)         # (1,1,1,C)
        mean = params["pixel_mean"].reshape(C)
        inv_std = 1.0 / params["pixel_std"].reshape(C)
        w_folded = params["conv_w"] * inv_std[None, :, None]                    # (9, C, Cf)
        conv_b_folded = (params["conv_b"].reshape(-1)
                         - jnp.sum(w_folded * mean[None, :, None], axis=(0, 1)))  # (Cf,)
        conv_w = jnp.zeros((KCpad, Cf), jnp.float32)
        conv_w = conv_w.at[:9 * C, :].set(w_folded.reshape(9 * C, Cf))
        self.conv_w = conv_w.astype(jnp.bfloat16)

        # Fixed grid proposal boxes (x0, y0, x1, y1) in input-image pixels.
        ch, cw = H // G, W // G
        gi, gj = jnp.meshgrid(jnp.arange(G), jnp.arange(G), indexing="ij")
        x0 = (gj * cw).reshape(-1).astype(jnp.float32)
        y0 = (gi * ch).reshape(-1).astype(jnp.float32)
        self.proposal_boxes = jnp.stack([x0, y0, x0 + cw, y0 + ch], axis=-1)    # (R, 4)

        # 0/1 ROI pooling matrix, pre-scaled by 1/area (average folded into the matmul).
        rows = jnp.arange(H) // ch
        cols = jnp.arange(W) // cw
        cell_id = (rows[:, None] * G + cols[None, :]).reshape(-1)               # (H*W,)
        self.pool_mat = ((jnp.arange(R)[:, None] == cell_id[None, :])
                         .astype(jnp.float32)
                         * (1.0 / float(ch * cw))).astype(jnp.bfloat16)         # (R, HW)

        self.fc1_w = params["fc1_w"].astype(jnp.bfloat16)                       # (Cf, Hd)

        # Fused head/relation weight (Hd, 256): [cls | box | 0.. || rel_ws | rel_wo | 0..].
        hw_comb = jnp.zeros((Hd, 2 * L), jnp.float32)
        hw_comb = hw_comb.at[:, :NCLS].set(params["cls_w"])
        hw_comb = hw_comb.at[:, NCLS:NCLS + 4].set(params["box_w"])
        hw_comb = hw_comb.at[:, L:L + P].set(params["rel_ws"])
        hw_comb = hw_comb.at[:, L + P:L + 2 * P].set(params["rel_wo"])
        self.head_rel_w = hw_comb.astype(jnp.bfloat16)

        # Folded RPN score weight: score = pooled @ mean_a(rpn_w) + mean(rpn_b)  (exact,
        # since every pooling row sums to 1).  One nonzero lane (NCLS+4).
        w_score = jnp.mean(params["rpn_w"], axis=1)                             # (Cf,)
        b_score = jnp.mean(params["rpn_b"])                                     # scalar
        score_w = jnp.zeros((Cf, L), jnp.float32).at[:, NCLS + 4].set(w_score)
        self.score_w = score_w.astype(jnp.bfloat16)

        # Constant expansion matrix:  TILE[p, j*P+q] = (q == p)
        #   exp[:, :RP]      [i, j*P+p] = subj[i, p]
        #   exp[:, L:L+RP]   [x, j*P+p] = obj[x, p]
        tile = jnp.tile(jnp.eye(P, dtype=jnp.float32), (1, R))                  # (P, RP)
        sel = jnp.zeros((L, 2 * L), jnp.float32)
        sel = sel.at[:P, :RP].set(tile)
        sel = sel.at[P:2 * P, L:L + RP].set(tile)
        self.sel = sel.astype(jnp.bfloat16)
        #   MASK[x, j*P+p] = (x == j) selects obj[j, p] into lane j*P+p.
        self.rel_mask = jnp.repeat(jnp.eye(R, dtype=jnp.float32), P, axis=1)    # (R, RP)

        # All biases packed into one (8, 128) f32 VMEM tile.
        bias = jnp.zeros((8, L), jnp.float32)
        bias = bias.at[0, :Cf].set(conv_b_folded)
        bias = bias.at[1, :Hd].set(params["fc1_b"].reshape(-1))
        bias = bias.at[2, :NCLS].set(params["cls_b"].reshape(-1))
        bias = bias.at[2, NCLS:NCLS + 4].set(params["box_b"].reshape(-1))
        bias = bias.at[2, NCLS + 4].set(b_score)
        bias = bias.at[3, :RP].set(
            jnp.tile(params["rel_b"].reshape(1, P), (1, R)).reshape(-1))
        self.bias_pack = bias

    # ---- fused Pallas forward (one pallas_call for the whole network) ----------
    def _fused_forward(self, patches):
        B = patches.shape[0]
        HW, KCpad, T = self.H * self.W, self.KCpad, self.hw_tile
        R, RP, L = self.R, self.RP, self.LANES
        Cf, Hd = self.Cf, self.Hd
        roi_slab, rel2d = pl.pallas_call(
            twostage_vrd_kernel,
            out_shape=(jax.ShapeDtypeStruct((B, R, L), jnp.float32),
                       jax.ShapeDtypeStruct((B, R, RP), jnp.float32)),
            grid=(B, HW // T),
            in_specs=[
                pl.BlockSpec((1, T, KCpad), lambda b, t: (b, t, 0)),   # im2col tile (bf16)
                pl.BlockSpec((R, T), lambda b, t: (0, t)),             # pooling tile
                pl.BlockSpec((KCpad, Cf), lambda b, t: (0, 0)),        # folded conv_w
                pl.BlockSpec((Cf, Hd), lambda b, t: (0, 0)),           # fc1_w
                pl.BlockSpec((Hd, 2 * L), lambda b, t: (0, 0)),        # fused head|rel weight
                pl.BlockSpec((Cf, L), lambda b, t: (0, 0)),            # folded RPN score weight
                pl.BlockSpec((L, 2 * L), lambda b, t: (0, 0)),         # subj/obj expansion
                pl.BlockSpec((R, RP), lambda b, t: (0, 0)),            # relation mask
                pl.BlockSpec((8, L), lambda b, t: (0, 0)),             # packed biases
            ],
            out_specs=(pl.BlockSpec((1, R, L), lambda b, t: (b, 0, 0)),
                       pl.BlockSpec((1, R, RP), lambda b, t: (b, 0, 0))),
            scratch_shapes=[pltpu.VMEM((R, Cf), jnp.float32)],         # pooled accumulator
            compiler_params=pltpu.CompilerParams(
                dimension_semantics=("parallel", "arbitrary"),
                vmem_limit_bytes=64 * 1024 * 1024),
        )(patches, self.pool_mat, self.conv_w, self.fc1_w, self.head_rel_w,
          self.score_w, self.sel, self.rel_mask, self.bias_pack)
        return roi_slab, rel2d

    # ---- full inference forward -------------------------------------------------
    def __call__(self, images_nchw):
        # images_nchw: (B, C, H, W) float32, PyTorch convention.
        B = images_nchw.shape[0]
        H, W, C = self.H, self.W, self.C
        x = jnp.transpose(images_nchw, (0, 2, 3, 1)).astype(jnp.float32)   # NHWC, raw pixels
        # Normalization is folded into conv_w/conv_b; the halo gets raw pixel_mean values
        # (== zero after the folded normalization), so border outputs match the original.
        # TODO(synk): ImageList.from_tensors pads each image to size_divisibility; all
        # images here share one (H, W), so no extra padding is needed.
        xp = jnp.broadcast_to(self.pixel_mean_nhwc, (B, H + 2, W + 2, C))
        xp = xp.at[:, 1:H + 1, 1:W + 1, :].set(x)
        # im2col so the 3x3 conv is one aligned-K bf16 MXU matmul in the kernel.
        # TODO(synk): at large resolutions, build the 9-tap patch tile in-kernel from the
        # padded image rows to remove the remaining ~9x (now bf16) patch HBM traffic.
        taps = [xp[:, dy:dy + H, dx:dx + W, :] for dy in range(3) for dx in range(3)]
        patches = jnp.concatenate(taps, axis=-1).reshape(B, H * W, 9 * C)
        if self.KCpad > 9 * C:
            patches = jnp.pad(patches, ((0, 0), (0, 0), (0, self.KCpad - 9 * C)))
        patches = patches.astype(jnp.bfloat16)

        roi_slab, rel2d = self._fused_forward(patches)

        NCLS = self.NCLS
        cls_logits = roi_slab[:, :, :NCLS]                     # (B, R, NCLS)
        box_deltas = roi_slab[:, :, NCLS:NCLS + 4]             # (B, R, 4)
        prop_scores = roi_slab[:, :, NCLS + 4:NCLS + 5]        # (B, R, 1)
        rel_logits = rel2d.reshape(B, self.R, self.R, self.P)  # (B, R, R, P)

        # postprocess glue (plain JAX):
        probs = jax.nn.softmax(cls_logits, axis=-1)
        pred_classes = jnp.argmax(cls_logits, axis=-1)
        scores = jnp.max(probs, axis=-1)
        # TODO(synk): real RPN does anchor decoding + top-k + NMS proposal selection; here
        # proposals are a fixed grid and pred_boxes = proposal + raw delta (no box decoding).
        prop_boxes = jnp.broadcast_to(self.proposal_boxes[None], (B, self.R, 4))
        pred_boxes = prop_boxes + box_deltas
        # TODO(synk): detector_postprocess rescales boxes to the requested "height"/"width";
        # identity here since output size == input size.
        return {
            "instances": {
                "pred_boxes": pred_boxes,        # (B, R, 4)
                "pred_classes": pred_classes,    # (B, R)
                "scores": scores,                # (B, R)
            },
            "relationships": {
                "rel_logits": rel_logits,        # (B, R, R, P)
                "proposal_scores": prop_scores,  # (B, R, 1)
            },
        }


# -----------------------------------------------------------------------------
# Deterministic parameter init + demo
# -----------------------------------------------------------------------------
def init_params(key, *, C, Cf, A, Hd, NCLS, P):
    ks = jax.random.split(key, 8)
    s = 0.1
    return {
        # detectron2 / cvpods default BGR pixel statistics
        "pixel_mean": jnp.array([103.530, 116.280, 123.675],
                                jnp.float32).reshape(1, 1, 1, C),
        "pixel_std": jnp.array([57.375, 57.120, 58.395],
                               jnp.float32).reshape(1, 1, 1, C),
        "conv_w": jax.random.normal(ks[0], (9, C, Cf), jnp.float32) * s,
        "conv_b": jnp.zeros((1, Cf), jnp.float32),
        "rpn_w": jax.random.normal(ks[1], (Cf, A), jnp.float32) * s,
        "rpn_b": jnp.zeros((1, A), jnp.float32),
        "fc1_w": jax.random.normal(ks[2], (Cf, Hd), jnp.float32) * s,
        "fc1_b": jnp.zeros((1, Hd), jnp.float32),
        "cls_w": jax.random.normal(ks[3], (Hd, NCLS), jnp.float32) * s,
        "cls_b": jnp.zeros((1, NCLS), jnp.float32),
        "box_w": jax.random.normal(ks[4], (Hd, 4), jnp.float32) * s,
        "box_b": jnp.zeros((1, 4), jnp.float32),
        "rel_ws": jax.random.normal(ks[5], (Hd, P), jnp.float32) * s,
        "rel_wo": jax.random.normal(ks[6], (Hd, P), jnp.float32) * s,
        "rel_b": jnp.zeros((1, P), jnp.float32),
    }


if __name__ == "__main__":
    B, C, H, W = 2, 3, 16, 16
    Cf, A, G, Hd, NCLS, P = 32, 8, 4, 64, 10, 8

    key = jax.random.PRNGKey(0)
    kp, ki = jax.random.split(key)
    params = init_params(kp, C=C, Cf=Cf, A=A, Hd=Hd, NCLS=NCLS, P=P)
    model = TwoStageVRDPallas(params, H=H, W=W, C=C, Cf=Cf, A=A, G=G,
                              Hd=Hd, NCLS=NCLS, P=P, hw_tile=128)

    # PyTorch-style NCHW uint8-range image batch.
    images = jax.random.uniform(ki, (B, C, H, W), jnp.float32, 0.0, 255.0)

    forward = jax.jit(lambda imgs: model(imgs))
    out = forward(images)
    out = jax.block_until_ready(out)

    R = G * G
    assert out["instances"]["pred_boxes"].shape == (B, R, 4)
    assert out["instances"]["pred_classes"].shape == (B, R)
    assert out["instances"]["scores"].shape == (B, R)
    assert out["relationships"]["rel_logits"].shape == (B, R, R, P)
    assert out["relationships"]["proposal_scores"].shape == (B, R, 1)
    print("KERNEL_OK")
</pallas_src>

<mosaic_0001>
module attributes {stable_mosaic.version = 11 : i64} {
  func.func @twostage_vrd_kernel(%arg0: i32, %arg1: i32, %arg2: memref<1x128x32xbf16, #tpu.memory_space<vmem>>, %arg3: memref<16x128xbf16, #tpu.memory_space<vmem>>, %arg4: memref<32x32xbf16, #tpu.memory_space<vmem>>, %arg5: memref<32x64xbf16, #tpu.memory_space<vmem>>, %arg6: memref<64x256xbf16, #tpu.memory_space<vmem>>, %arg7: memref<32x128xbf16, #tpu.memory_space<vmem>>, %arg8: memref<128x256xbf16, #tpu.memory_space<vmem>>, %arg9: memref<16x128xf32, #tpu.memory_space<vmem>>, %arg10: memref<8x128xf32, #tpu.memory_space<vmem>>, %arg11: memref<1x16x128xf32, #tpu.memory_space<vmem>>, %arg12: memref<1x16x128xf32, #tpu.memory_space<vmem>>, %arg13: memref<16x32xf32, #tpu.memory_space<vmem>>) attributes {dimension_semantics = [#tpu.dimension_semantics<parallel>, #tpu.dimension_semantics<arbitrary>], iteration_bounds = array<i64: 2, 2>, scalar_prefetch = 0 : i64, scratch_operands = 1 : i64, tpu.core_type = #tpu.core_type<tc>, window_params = [{transform_indices = @transform_0, window_bounds = array<i64: 1, 128, 32>}, {transform_indices = @transform_1, window_bounds = array<i64: 16, 128>}, {pipeline_mode = #tpu.pipeline_mode<synchronous>, transform_indices = @transform_2, window_bounds = array<i64: 32, 32>}, {pipeline_mode = #tpu.pipeline_mode<synchronous>, transform_indices = @transform_3, window_bounds = array<i64: 32, 64>}, {pipeline_mode = #tpu.pipeline_mode<synchronous>, transform_indices = @transform_4, window_bounds = array<i64: 64, 256>}, {pipeline_mode = #tpu.pipeline_mode<synchronous>, transform_indices = @transform_5, window_bounds = array<i64: 32, 128>}, {pipeline_mode = #tpu.pipeline_mode<synchronous>, transform_indices = @transform_6, window_bounds = array<i64: 128, 256>}, {pipeline_mode = #tpu.pipeline_mode<synchronous>, transform_indices = @transform_7, window_bounds = array<i64: 16, 128>}, {pipeline_mode = #tpu.pipeline_mode<synchronous>, transform_indices = @transform_8, window_bounds = array<i64: 8, 128>}, {transform_indices = @transform_9, window_bounds = array<i64: 1, 16, 128>}, {transform_indices = @transform_10, window_bounds = array<i64: 1, 16, 128>}]} {
    %c0_i32 = arith.constant 0 : i32
    %0 = arith.cmpi eq, %arg1, %c0_i32 : i32
    %1 = arith.extui %0 : i1 to i32
    %c0_i32_0 = arith.constant 0 : i32
    %2 = arith.cmpi ne, %1, %c0_i32_0 : i32
    scf.if %2 {
      %cst_16 = arith.constant 0.000000e+00 : f32
      %21 = vector.broadcast %cst_16 : f32 to vector<16x32xf32>
      %c0_17 = arith.constant 0 : index
      %c0_18 = arith.constant 0 : index
      %22 = vector.load %arg13[%c0_17, %c0_18] : memref<16x32xf32, #tpu.memory_space<vmem>>, vector<16x32xf32>
      tpu.vector_store %arg13[%c0_17, %c0_18], %21 {strides = array<i32>} : memref<16x32xf32, #tpu.memory_space<vmem>>, vector<16x32xf32>,
    } else {
    }
    %c0 = arith.constant 0 : index
    %c0_1 = arith.constant 0 : index
    %3 = vector.load %arg10[%c0, %c0_1] : memref<8x128xf32, #tpu.memory_space<vmem>>, vector<1x32xf32>
    %c0_2 = arith.constant 0 : index
    %c0_3 = arith.constant 0 : index
    %c0_4 = arith.constant 0 : index
    %4 = vector.load %arg2[%c0_2, %c0_3, %c0_4] : memref<1x128x32xbf16, #tpu.memory_space<vmem>>, vector<1x128x32xbf16>
    %5 = vector.shape_cast %4 : vector<1x128x32xbf16> to vector<128x32xbf16>
    %c0_5 = arith.constant 0 : index
    %c0_6 = arith.constant 0 : index
    %6 = vector.load %arg4[%c0_5, %c0_6] : memref<32x32xbf16, #tpu.memory_space<vmem>>, vector<32x32xbf16>
    %cst = arith.constant dense<0.000000e+00> : vector<128x32xf32>
    %7 = tpu.matmul %5, %6, %cst {dimension_numbers = #tpu.dot_dimension_numbers<[1], [0], [0], [1], [0, 0, 1, 1], [], []>} : vector<128x32xbf16>, vector<32x32xbf16>, vector<128x32xf32> -> vector<128x32xf32>
    %8 = vector.broadcast %3 : vector<1x32xf32> to vector<128x32xf32>
    %9 = arith.addf %7, %8 : vector<128x32xf32>
    %cst_7 = arith.constant 0.000000e+00 : f32
    %10 = vector.broadcast %cst_7 : f32 to vector<128x32xf32>
    %11 = arith.maximumf %9, %10 : vector<128x32xf32>
    %c0_8 = arith.constant 0 : index
    %c0_9 = arith.constant 0 : index
    %12 = vector.load %arg13[%c0_8, %c0_9] : memref<16x32xf32, #tpu.memory_space<vmem>>, vector<16x32xf32>
    %c0_10 = arith.constant 0 : index
    %c0_11 = arith.constant 0 : index
    %13 = vector.load %arg3[%c0_10, %c0_11] : memref<16x128xbf16, #tpu.memory_space<vmem>>, vector<16x128xbf16>
    %14 = arith.truncf %11 : vector<128x32xf32> to vector<128x32xbf16>
    %cst_12 = arith.constant dense<0.000000e+00> : vector<16x32xf32>
    %15 = tpu.matmul %13, %14, %cst_12 {dimension_numbers = #tpu.dot_dimension_numbers<[1], [0], [0], [1], [0, 0, 1, 1], [], []>} : vector<16x128xbf16>, vector<128x32xbf16>, vector<16x32xf32> -> vector<16x32xf32>
    %16 = arith.addf %12, %15 : vector<16x32xf32>
    %c0_13 = arith.constant 0 : index
    %c0_14 = arith.constant 0 : index
    %17 = vector.load %arg13[%c0_13, %c0_14] : memref<16x32xf32, #tpu.memory_space<vmem>>, vector<16x32xf32>
    tpu.vector_store %arg13[%c0_13, %c0_14], %16 {strides = array<i32>} : memref<16x32xf32, #tpu.memory_space<vmem>>, vector<16x32xf32>,
    %c1_i32 = arith.constant 1 : i32
    %18 = arith.cmpi eq, %arg1, %c1_i32 : i32
    %19 = arith.extui %18 : i1 to i32
    %c0_i32_15 = arith.constant 0 : i32
    %20 = arith.cmpi ne, %19, %c0_i32_15 : i32
    scf.if %20 {
      %c1 = arith.constant 1 : index
      %c0_16 = arith.constant 0 : index
      %21 = vector.load %arg10[%c1, %c0_16] : memref<8x128xf32, #tpu.memory_space<vmem>>, vector<1x64xf32>
      %c2 = arith.constant 2 : index
      %c0_17 = arith.constant 0 : index
      %22 = vector.load %arg10[%c2, %c0_17] : memref<8x128xf32, #tpu.memory_space<vmem>>, vector<1x128xf32>
      %c3 = arith.constant 3 : index
      %c0_18 = arith.constant 0 : index
      %23 = vector.load %arg10[%c3, %c0_18] : memref<8x128xf32, #tpu.memory_space<vmem>>, vector<1x128xf32>
      %c0_19 = arith.constant 0 : index
      %c0_20 = arith.constant 0 : index
      %24 = vector.load %arg13[%c0_19, %c0_20] : memref<16x32xf32, #tpu.memory_space<vmem>>, vector<16x32xf32>
      %25 = arith.truncf %24 : vector<16x32xf32> to vector<16x32xbf16>
      %c0_21 = arith.constant 0 : index
      %c0_22 = arith.constant 0 : index
      %26 = vector.load %arg5[%c0_21, %c0_22] : memref<32x64xbf16, #tpu.memory_space<vmem>>, vector<32x64xbf16>
      %cst_23 = arith.constant dense<0.000000e+00> : vector<16x64xf32>
      %27 = tpu.matmul %25, %26, %cst_23 {dimension_numbers = #tpu.dot_dimension_numbers<[1], [0], [0], [1], [0, 0, 1, 1], [], []>} : vector<16x32xbf16>, vector<32x64xbf16>, vector<16x64xf32> -> vector<16x64xf32>
      %28 = vector.broadcast %21 : vector<1x64xf32> to vector<16x64xf32>
      %29 = arith.addf %27, %28 : vector<16x64xf32>
      %cst_24 = arith.constant 0.000000e+00 : f32
      %30 = vector.broadcast %cst_24 : f32 to vector<16x64xf32>
      %31 = arith.maximumf %29, %30 : vector<16x64xf32>
      %32 = arith.truncf %31 : vector<16x64xf32> to vector<16x64xbf16>
      %c0_25 = arith.constant 0 : index
      %c0_26 = arith.constant 0 : index
      %33 = vector.load %arg6[%c0_25, %c0_26] : memref<64x256xbf16, #tpu.memory_space<vmem>>, vector<64x256xbf16>
      %cst_27 = arith.constant dense<0.000000e+00> : vector<16x256xf32>
      %34 = tpu.matmul %32, %33, %cst_27 {dimension_numbers = #tpu.dot_dimension_numbers<[1], [0], [0], [1], [0, 0, 1, 1], [], []>} : vector<16x64xbf16>, vector<64x256xbf16>, vector<16x256xf32> -> vector<16x256xf32>
      %c0_28 = arith.constant 0 : index
      %c0_29 = arith.constant 0 : index
      %35 = vector.load %arg7[%c0_28, %c0_29] : memref<32x128xbf16, #tpu.memory_space<vmem>>, vector<32x128xbf16>
      %cst_30 = arith.constant dense<0.000000e+00> : vector<16x128xf32>
      %36 = tpu.matmul %25, %35, %cst_30 {dimension_numbers = #tpu.dot_dimension_numbers<[1], [0], [0], [1], [0, 0, 1, 1], [], []>} : vector<16x32xbf16>, vector<32x128xbf16>, vector<16x128xf32> -> vector<16x128xf32>
      %37 = vector.extract_strided_slice %34 {offsets = [0, 0], sizes = [16, 128], strides = [1, 1]} : vector<16x256xf32> to vector<16x128xf32>
      %38 = arith.addf %37, %36 : vector<16x128xf32>
      %39 = vector.broadcast %22 : vector<1x128xf32> to vector<16x128xf32>
      %40 = arith.addf %38, %39 : vector<16x128xf32>
      %41 = vector.shape_cast %40 : vector<16x128xf32> to vector<1x16x128xf32>
      %c0_31 = arith.constant 0 : index
      %c0_32 = arith.constant 0 : index
      %c0_33 = arith.constant 0 : index
      %42 = vector.load %arg11[%c0_31, %c0_32, %c0_33] : memref<1x16x128xf32, #tpu.memory_space<vmem>>, vector<1x16x128xf32>
      tpu.vector_store %arg11[%c0_31, %c0_32, %c0_33], %41 {strides = array<i32>} : memref<1x16x128xf32, #tpu.memory_space<vmem>>, vector<1x16x128xf32>,
      %43 = vector.extract_strided_slice %34 {offsets = [0, 128], sizes = [16, 128], strides = [1, 1]} : vector<16x256xf32> to vector<16x128xf32>
      %44 = arith.truncf %43 : vector<16x128xf32> to vector<16x128xbf16>
      %c0_34 = arith.constant 0 : index
      %c0_35 = arith.constant 0 : index
      %45 = vector.load %arg8[%c0_34, %c0_35] : memref<128x256xbf16, #tpu.memory_space<vmem>>, vector<128x256xbf16>
      %cst_36 = arith.constant dense<0.000000e+00> : vector<16x256xf32>
      %46 = tpu.matmul %44, %45, %cst_36 {dimension_numbers = #tpu.dot_dimension_numbers<[1], [0], [0], [1], [0, 0, 1, 1], [], []>} : vector<16x128xbf16>, vector<128x256xbf16>, vector<16x256xf32> -> vector<16x256xf32>
      %47 = vector.extract_strided_slice %46 {offsets = [0, 0], sizes = [16, 128], strides = [1, 1]} : vector<16x256xf32> to vector<16x128xf32>
      %48 = vector.extract_strided_slice %46 {offsets = [0, 128], sizes = [16, 128], strides = [1, 1]} : vector<16x256xf32> to vector<16x128xf32>
      %c0_37 = arith.constant 0 : index
      %c0_38 = arith.constant 0 : index
      %49 = vector.load %arg9[%c0_37, %c0_38] : memref<16x128xf32, #tpu.memory_space<vmem>>, vector<16x128xf32>
      %50 = arith.mulf %48, %49 : vector<16x128xf32>
      %cst_39 = arith.constant dense<0.000000e+00> : vector<128xf32>
      %51 = vector.multi_reduction <add>, %50, %cst_39 [0] : vector<16x128xf32> to vector<128xf32>
      %52 = vector.shape_cast %51 : vector<128xf32> to vector<1x128xf32>
      %53 = vector.broadcast %52 : vector<1x128xf32> to vector<16x128xf32>
      %54 = arith.addf %47, %53 : vector<16x128xf32>
      %55 = vector.broadcast %23 : vector<1x128xf32> to vector<16x128xf32>
      %56 = arith.addf %54, %55 : vector<16x128xf32>
      %57 = vector.shape_cast %56 : vector<16x128xf32> to vector<1x16x128xf32>
      %c0_40 = arith.constant 0 : index
      %c0_41 = arith.constant 0 : index
      %c0_42 = arith.constant 0 : index
      %58 = vector.load %arg12[%c0_40, %c0_41, %c0_42] : memref<1x16x128xf32, #tpu.memory_space<vmem>>, vector<1x16x128xf32>
      tpu.vector_store %arg12[%c0_40, %c0_41, %c0_42], %57 {strides = array<i32>} : memref<1x16x128xf32, #tpu.memory_space<vmem>>, vector<1x16x128xf32>,
    } else {
    }
    return
  }
  func.func @transform_0(%arg0: i32, %arg1: i32) -> (i32, i32, i32) {
    %c0_i32 = arith.constant 0 : i32
    %c0_i32_0 = arith.constant 0 : i32
    return %arg0, %arg1, %c0_i32 : i32, i32, i32
  }
  func.func @transform_1(%arg0: i32, %arg1: i32) -> (i32, i32) {
    %c0_i32 = arith.constant 0 : i32
    %c0_i32_0 = arith.constant 0 : i32
    return %c0_i32, %arg1 : i32, i32
  }
  func.func @transform_2(%arg0: i32, %arg1: i32) -> (i32, i32) {
    %c0_i32 = arith.constant 0 : i32
    %c0_i32_0 = arith.constant 0 : i32
    %c0_i32_1 = arith.constant 0 : i32
    return %c0_i32, %c0_i32_0 : i32, i32
  }
  func.func @transform_3(%arg0: i32, %arg1: i32) -> (i32, i32) {
    %c0_i32 = arith.constant 0 : i32
    %c0_i32_0 = arith.constant 0 : i32
    %c0_i32_1 = arith.constant 0 : i32
    return %c0_i32, %c0_i32_0 : i32, i32
  }
  func.func @transform_4(%arg0: i32, %arg1: i32) -> (i32, i32) {
    %c0_i32 = arith.constant 0 : i32
    %c0_i32_0 = arith.constant 0 : i32
    %c0_i32_1 = arith.constant 0 : i32
    return %c0_i32, %c0_i32_0 : i32, i32
  }
  func.func @transform_5(%arg0: i32, %arg1: i32) -> (i32, i32) {
    %c0_i32 = arith.constant 0 : i32
    %c0_i32_0 = arith.constant 0 : i32
    %c0_i32_1 = arith.constant 0 : i32
    return %c0_i32, %c0_i32_0 : i32, i32
  }
  func.func @transform_6(%arg0: i32, %arg1: i32) -> (i32, i32) {
    %c0_i32 = arith.constant 0 : i32
    %c0_i32_0 = arith.constant 0 : i32
    %c0_i32_1 = arith.constant 0 : i32
    return %c0_i32, %c0_i32_0 : i32, i32
  }
  func.func @transform_7(%arg0: i32, %arg1: i32) -> (i32, i32) {
    %c0_i32 = arith.constant 0 : i32
    %c0_i32_0 = arith.constant 0 : i32
    %c0_i32_1 = arith.constant 0 : i32
    return %c0_i32, %c0_i32_0 : i32, i32
  }
  func.func @transform_8(%arg0: i32, %arg1: i32) -> (i32, i32) {
    %c0_i32 = arith.constant 0 : i32
    %c0_i32_0 = arith.constant 0 : i32
    %c0_i32_1 = arith.constant 0 : i32
    return %c0_i32, %c0_i32_0 : i32, i32
  }
  func.func @transform_9(%arg0: i32, %arg1: i32) -> (i32, i32, i32) {
    %c0_i32 = arith.constant 0 : i32
    %c0_i32_0 = arith.constant 0 : i32
    %c0_i32_1 = arith.constant 0 : i32
    return %arg0, %c0_i32, %c0_i32_0 : i32, i32, i32
  }
  func.func @transform_10(%arg0: i32, %arg1: i32) -> (i32, i32, i32) {
    %c0_i32 = arith.constant 0 : i32
    %c0_i32_0 = arith.constant 0 : i32
    %c0_i32_1 = arith.constant 0 : i32
    return %arg0, %c0_i32, %c0_i32_0 : i32, i32, i32
  }
}

</mosaic_0001>

<bundles_post_ra>
// kernel: _lambda_.1
= control target key start
LH: loop header
LB: loop body
LE: loop exit
PB: predicated region body
PF: predicated region fallthrough
CT: control target
= control target key end

     0   :  { %s3095_s0 = inlined_call_operand.hbm [shape: bf16[2,256,32], index: 0, kind: input, shape index: {}]   ;;  %s3096_s1 = inlined_call_operand.hbm [shape: bf16[16,256], index: 1, kind: input, shape index: {}]   ;;  %s3097_s2 = inlined_call_operand.hbm [shape: bf16[32,32], index: 2, kind: input, shape index: {}]   ;;  %s3098_s3 = inlined_call_operand.hbm [shape: bf16[32,64], index: 3, kind: input, shape index: {}]   ;;  %s3099_s4 = inlined_call_operand.hbm [shape: bf16[64,256], index: 4, kind: input, shape index: {}]   ;;  %s3100_s5 = inlined_call_operand.hbm [shape: bf16[32,128], index: 5, kind: input, shape index: {}]   ;;  %s3101_s6 = inlined_call_operand.hbm [shape: bf16[128,256], index: 6, kind: input, shape index: {}]   ;;  %s3102_s7 = inlined_call_operand.hbm [shape: f32[16,128], index: 7, kind: input, shape index: {}]   ;;  %s3103_s8 = inlined_call_operand.hbm [shape: f32[8,128], index: 8, kind: input, shape index: {}]   ;;  %s3104_s9 = inlined_call_operand.hbm [shape: f32[2,16,128], index: 9, kind: output, shape index: {0}]   ;;  %s3105_s10 = inlined_call_operand.hbm [shape: f32[2,16,128], index: 10, kind: output, shape index: {1}]  }
   0x1   :  { %3129 = sst [smem:[#allocation38_spill]] %s3095_s0 }
   0x2   :  { %3130 = sst [smem:[#allocation39_spill]] %s3096_s1 }
   0x3   :  { %3131 = sst [smem:[#allocation40_spill]] %s3097_s2 }
   0x4   :  { %3132 = sst [smem:[#allocation41_spill]] %s3098_s3 }
   0x5   :  { %3133 = sst [smem:[#allocation42_spill]] %s3099_s4 }
   0x6   :  { %3134 = sst [smem:[#allocation43_spill]] %s3100_s5 }
   0x7   :  { %3135 = sst [smem:[#allocation44_spill]] %s3101_s6 }
   0x8   :  { %3136 = sst [smem:[#allocation45_spill]] %s3102_s7 }
   0x9   :  { %3137 = sst [smem:[#allocation46_spill]] %s3103_s8 }
   0xa   :  { %3138 = sst [smem:[#allocation47_spill]] %s3104_s9 }
   0xb   :  { %3139 = sst [smem:[#allocation48_spill]] %s3105_s10 }
   0xc   :  { %16 = vsyncpa [#allocation4], 0 }
   0xd   :  { %18 = vsyncpa [#allocation4 + $0x1], 0 }
   0xe   :  { %19 = vsyncpa [#allocation7], 0 }
   0xf   :  { %21 = vsyncpa [#allocation7 + $0x1], 0 }
  0x10   :  { %22 = vsyncpa [#allocation10], 0 }
  0x11   :  { %23 = vsyncpa [#allocation13], 0 }
  0x12   :  { %24 = vsyncpa [#allocation16], 0 }
  0x13   :  { %25 = vsyncpa [#allocation5], 0 }
  0x14   :  { %27 = vsyncpa [#allocation5 + $0x1], 0 }
  0x15   :  { %28 = vsyncpa [#allocation20], 0 }
  0x16   :  { %30 = vsyncpa [#allocation20 + $0x1], 0  ;;  %s2453_s13 = smov 0   ;;  %s2455_s14 = smov 0  }
  0x17   :  { %s2457_s15 = smov 0   ;;  %s2459_s16 = smov 0  }
  0x18   :  { %s2461_s17 = smov 0   ;;  %s2463_s18 = smov 0  }
  0x19   :  { %s2465_s19 = smov 0   ;;  %s2467_s20 = smov 0  }
  0x1a   :  { %s2469_s21 = smov 0   ;;  %s2471_s22 = smov 0  }
  0x1b   :  { %s2473_s23 = smov 0   ;;  %s2475_s24 = smov 0  }
  0x1c   :  { %s2477_s25 = smov 0   ;;  %s2479_s26 = smov 0  }
  0x1d LB: > { %3140 = sst [smem:[#allocation29_spill]] %s2321_s13  ;;  %s2524_s27 = sadd.s32 4294967295, %s2373_s26   ;;  %s2373_s26 = sphi %s2479_s26, %s36_s26   ;;  %s2369_s25 = sphi %s2477_s25, %s3219_s25   ;;  %s2365_s24 = sphi %s2475_s24, %s3218_s24   ;;  %s2361_s23 = sphi %s2473_s23, %s3217_s23   ;;  %s2357_s22 = sphi %s2471_s22, %s3216_s22   ;;  %s2353_s21 = sphi %s2469_s21, %s3215_s21   ;;  %s2349_s20 = sphi %s2467_s20, %s3214_s20   ;;  %s2345_s19 = sphi %s2465_s19, %s3213_s19   ;;  %s2341_s18 = sphi %s2463_s18, %s3212_s18   ;;  %s2337_s17 = sphi %s2461_s17, %s3207_s17   ;;  %s2333_s16 = sphi %s2459_s16, %s3206_s16   ;;  %s2329_s15 = sphi %s2457_s15, %s3211_s15   ;;  %s2325_s14 = sphi %s2455_s14, %s3210_s14   ;;  %s2321_s13 = sphi %s2453_s13, %s3205_s13  }
  0x1e   : > { %3141 = sst [smem:[#allocation30_spill]] %s2325_s14  ;;  %p1475_p0 = scmp.ge.s32.totalorder %s2373_s26, 1 }
  0x1f   : > { %3142 = sst [smem:[#allocation31_spill]] %s2333_s16  ;;  %p3115_p1 = scmp.eq.s32.totalorder %s2524_s27, 0 }
  0x20   : > { %3143 = sst [smem:[#allocation32_spill]] %s2337_s17  ;;  %p306_p2 = scmp.lt.s32.totalorder %s2373_s26, 5 }
  0x21   : > { %3144 = sst [smem:[#allocation33_spill]] %s2341_s18  ;;  %s2375_s29 = smov [#allocation8]  }
  0x22   : > { %3145 = sst [smem:[#allocation34_spill]] %s2357_s22  ;;  %p2529_p3 = pnand %p1475_p0, %p306_p2 }
  0x23   : > { %3146 = sst [smem:[#allocation35_spill]] %s2361_s23  ;;  %s318_s30 = sshll.u32 %s2375_s29, 4  ;;  %s2533_s30 = int_to_ptr.vmem [resolvable:$true] %s318_s30 }
  0x24   : > { %s3147_s28 = scalar_select %p2529_p3, 1, 0 }
  0x25   : > { %p1685_p4 = pneg %p2529_p3  ;;  %s2376_s12 = smov [#allocation9]  }
  0x26   : > { %3148 = sst [smem:[#allocation36_spill]] %s3147_s28  ;;  %s331_s10 = sshll.u32 %s2376_s12, 4  ;;  %s2543_s10 = int_to_ptr.vmem [resolvable:$true] %s331_s10 }
  0x27   : > { %p2539_p5 = pnand %p1685_p4, %p3115_p1  ;;  %s2377_s9 = smov [#allocation12]  }
  0x28   : > { %s2545_s23 = sshll.u32 %s2377_s9, 4  ;;  %s3150_s2 = sld [smem:[#allocation40_spill]]  ;;  %s358_s23 = int_to_ptr.vmem [resolvable:$true] %s2545_s23 }
  0x29   : > { %p2555_p7 = pneg %p2539_p5 }
  0x2e   : > { %s1919_s29 = scalar_lea.hbm %s3150_s2, 256 }
  0x2f   : > { %p1920_p6 = scmp.ne.s32.totalorder %s3150_s2, %s1919_s29  ;;  %p1926_p10 = scmp.lt.u32.totalorder %s1919_s29, %s3150_s2 }
  0x31   : > { %p1922_p8 = pnand %p2555_p7, %p1920_p6 }
  0x33   : > { %p1923_p9 = pneg %p1922_p8 }
  0x35   : > { %p1928_p11 = pnand %p1926_p10, %p1923_p9 }
  0x37   : > { %1931 = shalt.err (!%p1928_p11)
}
  0x38   : > { %s1932_s1 = scalar_lea.vmem %s2533_s30, 256  ;;  %p1940_p2 = scmp.lt.s32.totalorder %s2533_s30, %s2533_s30 }
  0x39   : > { %p1933_p12 = scmp.ne.s32.totalorder %s2533_s30, %s1932_s1  ;;  %p1941_p4 = scmp.lt.s32.totalorder %s1932_s1, %s1932_s1 }
  0x3b   : > { %p1935_p13 = pnand %p1933_p12, %p2555_p7  ;;  %p1942_p6 = por %p1941_p4, %p1940_p2 }
  0x3d   : > { %p1936_p0 = pneg %p1935_p13 }
  0x3f   : > { %p1943_p8 = pnand %p1942_p6, %p1936_p0 }
  0x41   : > { %1946 = shalt.err (!%p1943_p8)
}
  0x42   : > { %s3117_s16 = smov 64   ;;  %s3119_s22 = smov 4  }
  0x43   : > { %1688 = dma.hbm_to_vmem [thread:$0]  (!%p2539_p5), %s3150_s2, 256, %s2533_s30, [#allocation7], %s3117_s16, %s3117_s16, %s3119_s22  }
  0x44   : > { %s3152_s3 = sld [smem:[#allocation41_spill]] }
  0x4a   : > { %s1947_s1 = scalar_lea.hbm %s3152_s3, 256 }
  0x4b   : > { %p1948_p9 = scmp.ne.s32.totalorder %s3152_s3, %s1947_s1  ;;  %p1954_p12 = scmp.lt.u32.totalorder %s1947_s1, %s3152_s3 }
  0x4d   : > { %p1950_p10 = pnand %p1948_p9, %p2555_p7 }
  0x4f   : > { %p1951_p11 = pneg %p1950_p10 }
  0x51   : > { %p1956_p13 = pnand %p1954_p12, %p1951_p11 }
  0x53   : > { %1959 = shalt.err (!%p1956_p13)
}
  0x54   : > { %s1960_s30 = scalar_lea.vmem %s2543_s10, 256  ;;  %p1968_p6 = scmp.lt.s32.totalorder %s2543_s10, %s2543_s10 }
  0x55   : > { %p1961_p0 = scmp.ne.s32.totalorder %s2543_s10, %s1960_s30  ;;  %p1969_p8 = scmp.lt.s32.totalorder %s1960_s30, %s1960_s30 }
  0x57   : > { %p1963_p2 = pnand %p1961_p0, %p2555_p7  ;;  %p1970_p9 = por %p1969_p8, %p1968_p6 }
  0x59   : > { %p1964_p4 = pneg %p1963_p2 }
  0x5b   : > { %p1971_p10 = pnand %p1970_p9, %p1964_p4 }
  0x5d   : > { %1974 = shalt.err (!%p1971_p10)
}
  0x5e   : > { %1691 = dma.hbm_to_vmem [thread:$0]  (!%p2539_p5), %s3152_s3, 256, %s2543_s10, [#allocation10], %s3117_s16, %s3117_s16, %s3119_s22  }
  0x5f   : > { %s3153_s5 = sld [smem:[#allocation43_spill]] }
  0x65   : > { %s1975_s28 = scalar_lea.hbm %s3153_s5, 256 }
  0x66   : > { %p1976_p11 = scmp.ne.s32.totalorder %s3153_s5, %s1975_s28  ;;  %p1982_p0 = scmp.lt.u32.totalorder %s1975_s28, %s3153_s5 }
  0x68   : > { %p1978_p12 = pnand %p1976_p11, %p2555_p7 }
  0x6a   : > { %p1979_p13 = pneg %p1978_p12 }
  0x6c   : > { %p1984_p2 = pnand %p1982_p0, %p1979_p13 }
  0x6e   : > { %1987 = shalt.err (!%p1984_p2)
}
  0x6f   : > { %s1988_s30 = scalar_lea.vmem %s358_s23, 256  ;;  %p1996_p9 = scmp.lt.s32.totalorder %s358_s23, %s358_s23 }
  0x70   : > { %p1989_p4 = scmp.ne.s32.totalorder %s358_s23, %s1988_s30  ;;  %p1997_p10 = scmp.lt.s32.totalorder %s1988_s30, %s1988_s30 }
  0x72   : > { %p1991_p6 = pnand %p1989_p4, %p2555_p7  ;;  %p1998_p1 = por %p1997_p10, %p1996_p9 }
  0x74   : > { %p1992_p8 = pneg %p1991_p6 }
  0x76   : > { %p1999_p3 = pnand %p1998_p1, %p1992_p8 }
  0x78   : > { %2002 = shalt.err (!%p1999_p3)
}
  0x79   : > { %1697 = dma.hbm_to_vmem [thread:$0]  (!%p2539_p5), %s3153_s5, 256, %s358_s23, [#allocation13], %s3117_s16, %s3117_s16, %s3119_s22  }
  0x7a   : > { %s2380_s13 = smov [#allocation15]   ;;  %s2381_s18 = smov [#allocation11]  }
  0x7b   : > { %s383_s14 = sshll.u32 %s2380_s13, 4  ;;  %s344_s28 = sshll.u32 %s2381_s18, 4  ;;  %s384_s14 = int_to_ptr.vmem [resolvable:$true] %s383_s14  ;;  %s345_s28 = int_to_ptr.vmem [resolvable:$true] %s344_s28 }
  0x7c   : > { %s3154_s7 = sld [smem:[#allocation45_spill]] }
  0x82   : > { %s2003_s9 = scalar_lea.hbm %s3154_s7, 256 }
  0x83   : > { %p2004_p1 = scmp.ne.s32.totalorder %s3154_s7, %s2003_s9  ;;  %p2010_p12 = scmp.lt.u32.totalorder %s2003_s9, %s3154_s7 }
  0x85   : > { %p2006_p3 = pnand %p2004_p1, %p2555_p7 }
  0x87   : > { %p2007_p11 = pneg %p2006_p3 }
  0x89   : > { %p2012_p13 = pnand %p2010_p12, %p2007_p11 }
  0x8b   : > { %2015 = shalt.err (!%p2012_p13)
}
  0x8c   : > { %s2016_s23 = scalar_lea.vmem %s384_s14, 256  ;;  %p2024_p6 = scmp.lt.s32.totalorder %s384_s14, %s384_s14 }
  0x8d   : > { %p2017_p0 = scmp.ne.s32.totalorder %s384_s14, %s2016_s23  ;;  %p2025_p8 = scmp.lt.s32.totalorder %s2016_s23, %s2016_s23 }
  0x8f   : > { %p2019_p2 = pnand %p2017_p0, %p2555_p7  ;;  %p2026_p9 = por %p2025_p8, %p2024_p6 }
  0x91   : > { %p2020_p4 = pneg %p2019_p2 }
  0x93   : > { %p2027_p10 = pnand %p2026_p9, %p2020_p4 }
  0x95   : > { %2030 = shalt.err (!%p2027_p10)
}
  0x96   : > { %s3121_s0 = smov 128   ;;  %s2383_s13 = smov 8  }
  0x97   : > { %1703 = dma.hbm_to_vmem [thread:$0]  (!%p2539_p5), %s3154_s7, 256, %s384_s14, [#allocation16], %s3121_s0, %s3121_s0, %s2383_s13  }
  0x98   : > { %s3155_s4 = sld [smem:[#allocation42_spill]] }
  0x9e   : > { %s2031_s9 = scalar_lea.hbm %s3155_s4, 1024 }
  0x9f   : > { %p2032_p1 = scmp.ne.s32.totalorder %s3155_s4, %s2031_s9  ;;  %p2038_p12 = scmp.lt.u32.totalorder %s2031_s9, %s3155_s4 }
  0xa1   : > { %p2034_p3 = pnand %p2032_p1, %p2555_p7 }
  0xa3   : > { %p2035_p11 = pneg %p2034_p3 }
  0xa5   : > { %p2040_p13 = pnand %p2038_p12, %p2035_p11 }
  0xa7   : > { %2043 = shalt.err (!%p2040_p13)
}
  0xa8   : > { %s2044_s2 = scalar_lea.vmem %s345_s28, 1024  ;;  %p2052_p6 = scmp.lt.s32.totalorder %s345_s28, %s345_s28 }
  0xa9   : > { %p2045_p0 = scmp.ne.s32.totalorder %s345_s28, %s2044_s2  ;;  %p2053_p8 = scmp.lt.s32.totalorder %s2044_s2, %s2044_s2 }
  0xab   : > { %p2047_p2 = pnand %p2045_p0, %p2555_p7  ;;  %p2054_p9 = por %p2053_p8, %p2052_p6 }
  0xad   : > { %p2048_p4 = pneg %p2047_p2 }
  0xaf   : > { %p2055_p10 = pnand %p2054_p9, %p2048_p4 }
  0xb1   : > { %2058 = shalt.err (!%p2055_p10)
}
  0xb2   : > { %1694 = dma.hbm_to_vmem [thread:$0]  (!%p2539_p5), %s3155_s4, 1024, %s345_s28, [#allocation10], %s3121_s0, %s3121_s0, %s2383_s13  }
  0xb3   : > { %s2384_s29 = smov [#allocation14]   ;;  %s2385_s9 = smov [#allocation17]  }
  0xb4   : > { %s370_s12 = sshll.u32 %s2384_s29, 4  ;;  %s397_s1 = sshll.u32 %s2385_s9, 4  ;;  %s371_s12 = int_to_ptr.vmem [resolvable:$true] %s370_s12  ;;  %s398_s1 = int_to_ptr.vmem [resolvable:$true] %s397_s1 }
  0xb5   : > { %s3156_s6 = sld [smem:[#allocation44_spill]] }
  0xbb   : > { %s2059_s23 = scalar_lea.hbm %s3156_s6, 2048 }
  0xbc   : > { %p2060_p1 = scmp.ne.s32.totalorder %s3156_s6, %s2059_s23  ;;  %p2066_p12 = scmp.lt.u32.totalorder %s2059_s23, %s3156_s6 }
  0xbe   : > { %p2062_p3 = pnand %p2060_p1, %p2555_p7 }
  0xc0   : > { %p2063_p11 = pneg %p2062_p3 }
  0xc2   : > { %p2068_p13 = pnand %p2066_p12, %p2063_p11 }
  0xc4   : > { %2071 = shalt.err (!%p2068_p13)
}
  0xc5   : > { %s2072_s28 = scalar_lea.vmem %s371_s12, 2048  ;;  %p2080_p6 = scmp.lt.s32.totalorder %s371_s12, %s371_s12 }
  0xc6   : > { %p2073_p0 = scmp.ne.s32.totalorder %s371_s12, %s2072_s28  ;;  %p2081_p8 = scmp.lt.s32.totalorder %s2072_s28, %s2072_s28 }
  0xc8   : > { %p2075_p2 = pnand %p2073_p0, %p2555_p7  ;;  %p2082_p9 = por %p2081_p8, %p2080_p6 }
  0xca   : > { %p2076_p4 = pneg %p2075_p2 }
  0xcc   : > { %p2083_p10 = pnand %p2082_p9, %p2076_p4 }
  0xce   : > { %2086 = shalt.err (!%p2083_p10)
}
  0xcf   : > { %1700 = dma.hbm_to_vmem [thread:$0]  (!%p2539_p5), %s3156_s6, 2048, %s371_s12, [#allocation13], %s3121_s0, %s3121_s0, %s2383_s13  }
  0xd0   : > { %s3157_s8 = sld [smem:[#allocation46_spill]] }
  0xd6   : > { %s2087_s9 = scalar_lea.hbm %s3157_s8, 128 }
  0xd7   : > { %p2088_p1 = scmp.ne.s32.totalorder %s3157_s8, %s2087_s9  ;;  %p2094_p12 = scmp.lt.u32.totalorder %s2087_s9, %s3157_s8 }
  0xd9   : > { %p2090_p3 = pnand %p2088_p1, %p2555_p7 }
  0xdb   : > { %p2091_p11 = pneg %p2090_p3 }
  0xdd   : > { %p2096_p13 = pnand %p2094_p12, %p2091_p11 }
  0xdf   : > { %2099 = shalt.err (!%p2096_p13)
}
  0xe0   : > { %s2100_s14 = scalar_lea.vmem %s398_s1, 128  ;;  %p2108_p6 = scmp.lt.s32.totalorder %s398_s1, %s398_s1 }
  0xe1   : > { %p2101_p0 = scmp.ne.s32.totalorder %s398_s1, %s2100_s14  ;;  %p2109_p8 = scmp.lt.s32.totalorder %s2100_s14, %s2100_s14 }
  0xe3   : > { %p2103_p2 = pnand %p2101_p0, %p2555_p7  ;;  %p2110_p9 = por %p2109_p8, %p2108_p6 }
  0xe5   : > { %p2104_p4 = pneg %p2103_p2 }
  0xe7   : > { %p2111_p10 = pnand %p2110_p9, %p2104_p4 }
  0xe9   : > { %2114 = shalt.err (!%p2111_p10)
}
  0xea   : > { %1706 = dma.hbm_to_vmem [thread:$0]  (!%p2539_p5), %s3157_s8, 128, %s398_s1, [#allocation16]  }
  0xeb   : > { %s1474_s17 = sadd.s32 4294967294, %s2373_s26   ;;  %s45_s11 = sadd.s32 1, %s2365_s24 }
  0xec   : > { %s3158_s28 = sld [smem:[#allocation30_spill]]  ;;  %s48_s16 = sadd.s32 1, %s2369_s25 }
  0xed   : > { %p46_p7 = scmp.ge.s32.totalorder %s45_s11, 2  ;;  %s57_s22 = sadd.s32 1, %s2353_s21 }
  0xee   : > { %p64_p1 = scmp.ne.s32.totalorder %s2353_s21, %s2349_s20  ;;  %p3123_p3 = scmp.eq.s32.totalorder %s2373_s26, 0 }
  0xef   : > { %s3221_s11 = smov (%p46_p7, %s45_s11), 0  ;;  %s3223_s16 = smov (!%p46_p7, %s48_s16), %s2369_s25 }
  0xf0   : > { %s2720_s18 = ssub.s32 %s2365_s24, %s3221_s11  ;;  %p2724_p5 = por %p3123_p3, %p64_p1 }
  0xf1   : > { %s3160_s29 = sld [smem:[#allocation29_spill]]  ;;  %p50_p11 = scmp.ge.s32.totalorder %s3223_s16, 2 }
  0xf2   : > { %p70_p12 = scmp.ne.s32.totalorder %s2349_s20, %s2345_s19  ;;  %s256_s9 = sadd.s32 1, %s2329_s15 }
  0xf3   : > { %s3225_s16 = smov (%p50_p11, %s3223_s16), 0  ;;  %p3162_p0 = scmp.eq.s32.totalorder %s2524_s27, 0 }
  0xf4   : > { %3161 = sst [smem:[#allocation37_spill]] %s3225_s16  ;;  %p266_p4 = scmp.ne.s32.totalorder %s2329_s15, %s3158_s28 }
  0xf5   : > { %p2736_p2 = por %p3162_p0, %p70_p12  ;;  %s52_s10 = ssub.s32 %s2369_s25, %s3225_s16 }
  0xf6   : > { %p267_p6 = scmp.eq.s32.totalorder %s2524_s27, 3  ;;  %s54_s23 = sor.u32 %s2720_s18, %s52_s10 }
  0xf7   : > { %p254_p8 = scmp.eq.s32.totalorder %s52_s10, 0  ;;  %p55_p9 = scmp.eq.s32.totalorder %s54_s23, 0 }
  0xf8   : > { %p2746_p10 = por %p267_p6, %p266_p4  ;;  %p272_p7 = scmp.ne.s32.totalorder %s3158_s28, %s3160_s29 }
  0xf9   : > { %s2751_s2 = scalar_select %p254_p8, %s2329_s15, %s256_s9  }
  0xfa   : > { %s3164_s19 = scalar_select %p2746_p10, 1, 0 }
  0xfb   : > { %s2754_s14 = scalar_select %p55_p9, %s2353_s21, %s57_s22  }
  0xfc   : > { %p273_p1 = scmp.eq.s32.totalorder %s1474_s17, 3  ;;  %p3122_p11 = scmp.lt.s32.totalorder %s2373_s26, 4 }
  0xfd   : > { %s408_s13 = sand.u32 1, %s2353_s21   ;;  %s1485_s23 = sshll.u32 %s2365_s24, 4 }
  0xfe   : > { %p2760_p12 = por %p273_p1, %p272_p7  ;;  %s1484_s10 = sshll.u32 %s408_s13, 6 }
  0xff   : > { %s1486_s0 = sshll.u32 %s2369_s25, 5  ;;  %s412_s4 = scalar_lea.vmem [#allocation3], %s1484_s10 }
 0x100   : > { %s3165_s12 = scalar_select %p2760_p12, 1, 0 }
 0x101   : > { %s418_s3 = sadd.s32 %s1486_s0, %s1485_s23  ;;  %s421_s5 = sshll.u32 %s412_s4, 4  ;;  %s2766_s5 = int_to_ptr.vmem [resolvable:$true] %s421_s5 }
 0x102   : > { %s1487_s9 = sshll.u32 %s418_s3, 6  ;;  %s3166_s7 = sld [smem:[#allocation38_spill]] }
 0x103   : > { %p2777_p0 = pnand %p3122_p11, %p2724_p5  ;;  %s2781_s3 = scalar_lea.sflag [#allocation4], %s408_s13 }
 0x105   : > { %p2117_p6 = pneg %p2777_p0 }
 0x108   : > { %s2771_s28 = scalar_lea.hbm %s3166_s7, %s1487_s9  ;;  %s2120_s1 = scalar_lea.hbm %s3166_s7, 4096 }
 0x109   : > { %s2115_s4 = scalar_lea.hbm %s2771_s28, 1024  ;;  %p2121_p5 = scmp.lt.u32.totalorder %s2771_s28, %s3166_s7 }
 0x10a   : > { %p2116_p4 = scmp.ne.s32.totalorder %s2771_s28, %s2115_s4  ;;  %p2122_p7 = scmp.lt.u32.totalorder %s2120_s1, %s2115_s4 }
 0x10b   : > { %p2124_p11 = scmp.lt.u32.totalorder %s2115_s4, %s2771_s28 }
 0x10c   : > { %p2118_p8 = pnand %p2117_p6, %p2116_p4  ;;  %p2123_p1 = por %p2122_p7, %p2121_p5 }
 0x10e   : > { %p2119_p9 = pneg %p2118_p8  ;;  %p2125_p3 = por %p2124_p11, %p2123_p1 }
 0x110   : > { %p2126_p13 = pnand %p2125_p3, %p2119_p9 }
 0x112   : > { %2129 = shalt.err (!%p2126_p13)
}
 0x113   : > { %s2130_s13 = scalar_lea.vmem %s2766_s5, 1024  ;;  %s2386_s23 = smov [#allocation3]  }
 0x114   : > { %p2131_p4 = scmp.ne.s32.totalorder %s2766_s5, %s2130_s13  ;;  %s2135_s9 = sshll.u32 %s2386_s23, 4  ;;  %s2136_s9 = int_to_ptr.vmem [resolvable:$false] %s2135_s9 }
 0x115   : > { %s2137_s22 = scalar_lea.vmem %s2136_s9, 2048  ;;  %p2138_p10 = scmp.lt.s32.totalorder %s2766_s5, %s2136_s9 }
 0x116   : > { %p2133_p8 = pnand %p2131_p4, %p2117_p6  ;;  %p2139_p5 = scmp.lt.s32.totalorder %s2137_s22, %s2130_s13 }
 0x118   : > { %p2134_p12 = pneg %p2133_p8  ;;  %p2140_p7 = por %p2139_p5, %p2138_p10 }
 0x11a   : > { %p2141_p11 = pnand %p2140_p7, %p2134_p12 }
 0x11c   : > { %2144 = shalt.err (!%p2141_p11)
}
 0x11d   : > { %s3168_s4 = smov 4   ;;  %s3169_s6 = smov 64  }
 0x11e   : > { %s3170_s0 = sld [smem:[#allocation33_spill]]  ;;  %s3171_s1 = sld [smem:[#allocation32_spill]] }
 0x11f   : > { %s3172_s29 = sld [smem:[#allocation31_spill]]  ;;  %p3173_p3 = scmp.eq.s32.totalorder %s2720_s18, 0 }
 0x120   : > { %1710 = dma.hbm_to_vmem [thread:$0]  (!%p2777_p0), %s2771_s28, 1024, %s2766_s5, %s2781_s3, %s3169_s6, %s3169_s6, %s3168_s4  }
 0x121   : > { %s431_s13 = sand.u32 1, %s2373_s26   ;;  %p3174_p12 = scmp.eq.s32.totalorder %s2373_s26, 0 }
 0x122   : > { %p3175_p9 = scmp.eq.s32.totalorder %s2524_s27, 0  ;;  %s1489_s7 = sshll.u32 %s2365_s24, 6 }
 0x123   : > { %s3177_s5 = sld [smem:[#allocation39_spill]]  ;;  %p3178_p0 = scmp.lt.s32.totalorder %s2373_s26, 4 }
 0x124   : > { %s83_s17 = sadd.s32 1, %s3170_s0  ;;  %p90_p13 = scmp.ne.s32.totalorder %s3170_s0, %s3171_s1 }
 0x125   : > { %s2816_s10 = scalar_select %p3173_p3, %s3170_s0, %s83_s17  }
 0x126   : > { %p96_p10 = scmp.ne.s32.totalorder %s3171_s1, %s3172_s29  ;;  %s433_s23 = sand.u32 1, %s3170_s0  }
 0x127   : > { %p92_p6 = por %p90_p13, %p3174_p12  ;;  %s1488_s22 = sshll.u32 %s433_s23, 3 }
 0x128   : > { %p2828_p1 = por %p96_p10, %p3175_p9  ;;  %s435_s18 = scalar_lea.vmem [#allocation6], %s1488_s22 }
 0x129   : > { %s2836_s28 = scalar_lea.hbm %s3177_s5, %s1489_s7  ;;  %s441_s3 = sshll.u32 %s435_s18, 4  ;;  %s2838_s3 = int_to_ptr.vmem [resolvable:$true] %s441_s3 }
 0x12a   : > { %s3176_s9 = scalar_select %p2828_p1, 1, 0 }
 0x12b   : > { %p2842_p4 = pnand %p3178_p0, %p92_p6  ;;  %s2846_s1 = scalar_lea.sflag [#allocation7], %s431_s13 }
 0x12c   : > { %s2145_s8 = scalar_lea.hbm %s2836_s28, 128  ;;  %s2150_s29 = scalar_lea.hbm %s3177_s5, 256 }
 0x12d   : > { %p2146_p8 = scmp.ne.s32.totalorder %s2836_s28, %s2145_s8  ;;  %p2147_p5 = pneg %p2842_p4 }
 0x12e   : > { %p2151_p3 = scmp.lt.u32.totalorder %s2836_s28, %s3177_s5  ;;  %p2152_p13 = scmp.lt.u32.totalorder %s2150_s29, %s2145_s8 }
 0x12f   : > { %p2148_p7 = pnand %p2147_p5, %p2146_p8  ;;  %p2154_p12 = scmp.lt.u32.totalorder %s2145_s8, %s2836_s28 }
 0x130   : > { %p2153_p10 = por %p2152_p13, %p2151_p3 }
 0x131   : > { %p2149_p11 = pneg %p2148_p7 }
 0x132   : > { %p2155_p6 = por %p2154_p12, %p2153_p10 }
 0x134   : > { %p2156_p9 = pnand %p2155_p6, %p2149_p11 }
 0x136   : > { %2159 = shalt.err (!%p2156_p9)
}
 0x137   : > { %s2160_s13 = scalar_lea.vmem %s2838_s3, 128  ;;  %s2387_s22 = smov [#allocation6]  }
 0x138   : > { %p2161_p0 = scmp.ne.s32.totalorder %s2838_s3, %s2160_s13  ;;  %s2165_s18 = sshll.u32 %s2387_s22, 4  ;;  %s2166_s18 = int_to_ptr.vmem [resolvable:$false] %s2165_s18 }
 0x139   : > { %s2167_s7 = scalar_lea.vmem %s2166_s18, 256  ;;  %p2168_p1 = scmp.lt.s32.totalorder %s2838_s3, %s2166_s18 }
 0x13a   : > { %p2163_p8 = pnand %p2161_p0, %p2147_p5  ;;  %p2169_p3 = scmp.lt.s32.totalorder %s2167_s7, %s2160_s13 }
 0x13c   : > { %p2164_p7 = pneg %p2163_p8  ;;  %p2170_p13 = por %p2169_p3, %p2168_p1 }
 0x13e   : > { %p2171_p10 = pnand %p2170_p13, %p2164_p7 }
 0x140   : > { %2174 = shalt.err (!%p2171_p10)
}
 0x141   : > { %s3180_s8 = smov 128   ;;  %s3181_s16 = sld [smem:[#allocation36_spill]] }
 0x142   : > { %1713 = dma.hbm_to_vmem [thread:$0]  (!%p2842_p4), %s2836_s28, 128, %s2838_s3, %s2846_s1, %s3180_s8, %s3169_s6, %s3168_s4  }
 0x147   : > { %p3182_p5 = scmp.ne.s32.totalorder %s3181_s16, 0 }
 0x148   : > { %s455_s29 = sand.u32 (!%p3182_p5), 1, %s2349_s20  }
 0x149   : > { %453 = sbr.rel (%p3182_p5) target bundleno = 1588 (0x634), region = 56  ;;  %s1491_s17 = sshll.u32 (!%p3182_p5), %s455_s29, 6 }
 0x14a   : > { %s456_s23 = scalar_lea.sflag (!%p3182_p5), [#allocation4], %s455_s29  ;;  %s2880_s13 = scalar_lea.vmem (!%p3182_p5), [#allocation3], %s1491_s17 }
 0x150   : > { %2288 = dma.done.wait (%p2736_p2), %s456_s23, 1024  }
 0x151   : > { %2290 = vsyncadd (%p2736_p2), %s456_s23, 4294966272  ;;  %s3183_s0 = sld [smem:[#allocation32_spill]]  ;;  %s464_s22 = sand.u32 1, %s2524_s27  }
 0x152   : > { %s465_s28 = scalar_lea.sflag [#allocation7], %s464_s22  ;;  %p3184_p1 = scmp.ne.s32.totalorder %s3176_s9, 0 }
 0x157   : > { %s466_s4 = sand.u32 1, %s3183_s0  }
 0x158   : > { %s2888_s6 = sshll.u32 %s466_s4, 3 }
 0x159   : > { %s468_s3 = scalar_lea.vmem [#allocation6], %s2888_s6 }
 0x15a   : > { %2292 = dma.done.wait (%p3184_p1), %s465_s28, 128  }
 0x15b   : > { %2294 = vsyncadd (%p3184_p1), %s465_s28, 4294967168  ;;  %p3185_p4 = scmp.eq.s32.totalorder %s2524_s27, 0 }
 0x15d   : > { %2296 = dma.done.wait (%p3185_p4), [#allocation7], 256   ;;  %p3186_p2 = pmov %p3185_p4 }
 0x15f   : > { %2298 = vsyncadd (%p3186_p2), [#allocation7], 4294967040  ;;  %p3187_p11 = pmov %p3186_p2 }
 0x160   : > { %p3188_p12 = pmov %p3186_p2 }
 0x161   : > { %2300 = dma.done.wait (%p3187_p11), [#allocation10], 1280  }
 0x162   : > { %2302 = vsyncadd (%p3188_p12), [#allocation10], 4294966016  ;;  %p3189_p6 = pmov %p3186_p2 }
 0x163   : > { %p3190_p9 = pmov %p3186_p2 }
 0x164   : > { %2304 = dma.done.wait (%p3189_p6), [#allocation13], 2304  }
 0x165   : > { %2306 = vsyncadd (%p3190_p9), [#allocation13], 4294964992  ;;  %p3191_p0 = pmov %p3186_p2 }
 0x167   : > { %2308 = dma.done.wait (%p3191_p0), [#allocation16], 384   ;;  %p3192_p8 = pmov %p3191_p0 }
 0x168   : > { %s3193_s30 = sld [smem:[#allocation30_spill]]  ;;  %s3194_s8 = sld [smem:[#allocation34_spill]] }
 0x169   : > { %2310 = vsyncadd (%p3192_p8), [#allocation16], 4294966912 }
 0x16e   : > { %s2912_s9 = sand.u32 1, %s3193_s30   ;;  %p1502_p7 = scmp.ne.s32.totalorder %s3194_s8, 0 }
 0x16f   : > { %s1500_s1 = sshll.u32 %s2912_s9, 4  ;;  %vm549_vm0 = vcmask (!%p1502_p7), 261120   ;;  %v2388_v0 = vmov (!%p1502_p7), 0.0  }
 0x170   : > { %s2915_s18 = scalar_lea.vmem [#allocation18], %s1500_s1  ;;  %s2917_s7 = scalar_lea.vmem [#allocation19], %s1500_s1  ;;  %550 = vst.msk [vmem:[#allocation2] sm:$0xff] (!%p1502_p7), %vm549_vm0, %v2388_v0  ;;  %551 = vst.msk [vmem:[#allocation2 + $0x8] sm:$0xff] (!%p1502_p7), %vm549_vm0, %v2388_v0 }
 0x171   : > { %548 = sbr.rel (%p1502_p7) target bundleno = 376 (0x178), region = 96 }
 0x178 PF: > { %v1868_v1 = vld [vmem:[#allocation8] sm:$0xff]   ;;  %v1869_v2 = vld [vmem:[#allocation8 + $0x8] sm:$0xff]   ;;  %vm629_vm1 = vcmask 261120   ;;  %v1870_v3 = vld [vmem:[%s2880_s13] sm:$0xff]   ;;  %v2389_v11 = vmov 0.0   ;;  %vm2390_vm2 = vmmov 0  }
 0x179   : > { %1593 = vmatprep.subr.bf16.mxu0 %v1868_v1  ;;  %1597 = vmatprep.mubr.msk.bf16.mxu0 %vm629_vm1, %v1870_v3  ;;  %v1871_v4 = vld [vmem:[%s2880_s13 + $0x8] sm:$0xff]   ;;  %v1872_v5 = vld [vmem:[%s2880_s13 + $0x10] sm:$0xff]   ;;  %v1873_v6 = vld [vmem:[%s2880_s13 + $0x18] sm:$0xff]   ;;  %s3195_s27 = sld [smem:[#allocation34_spill]] }
 0x17a   : > { %1594 = vmatpush3.bf16.msra.mxu0 %v1868_v1  ;;  %v1874_v7 = vld [vmem:[%s2880_s13 + $0x20] sm:$0xff]   ;;  %v1875_v8 = vld [vmem:[%s2880_s13 + $0x28] sm:$0xff]   ;;  %v1876_v9 = vld [vmem:[%s2880_s13 + $0x30] sm:$0xff]   ;;  %1613 = vmatprep.subr.bf16.mxu1 %v2389_v11 }
 0x17b   : > { %1595 = vmatprep.subr.bf16.mxu0 %v1869_v2  ;;  %v1877_v10 = vld [vmem:[%s2880_s13 + $0x38] sm:$0xff]   ;;  %1629 = vmatprep.mubr.msk.bf16.mxu1 %vm2390_vm2, %v2389_v11  ;;  %v1503_v12 = vld [vmem:[#allocation17] ss:$0 sm:$0xff] }
 0x17e   : > { %1596 = vmatpush3.bf16.msra.mxu0 %v1869_v2 }
 0x17f   : > { %p1523_p3 = scmp.ne.s32.totalorder %s3195_s27, 1 }
 0x180   : > { %vm2392_vm3 = vmmov (!%p1523_p3), 0   ;;  %vm955_vm4 = vcmask (!%p1523_p3), 523264  }
 0x181   : > { %1598 = vmatmul.mubr.msk.bf16.vlgmr.msra.gmra.mrb[0].mxu0 %vm629_vm1, %v1871_v4 }
 0x182   : > { %1601 = vmatprep.mubr.msk.bf16.mxu0 %vm629_vm1, %v1872_v5  ;;  %v1878_v5 = vld [vmem:[%s468_s3] sm:$0xff]  }
 0x189   : > { %1602 = vmatmul.mubr.msk.bf16.gmra.mrb[4].mxu0 %vm629_vm1, %v1873_v6  ;;  %v767_v6 = vld [vmem:[#allocation2] sm:$0xff] }
 0x18a   : > { %1605 = vmatprep.mubr.msk.bf16.mxu0 %vm629_vm1, %v1874_v7 }
 0x191   : > { %1606 = vmatmul.mubr.msk.bf16.gmra.mrb[8].mxu0 %vm629_vm1, %v1875_v8  ;;  %v768_v8 = vld [vmem:[#allocation2 + $0x8] sm:$0xff] }
 0x192   : > { %1609 = vmatprep.mubr.msk.bf16.mxu0 %vm629_vm1, %v1876_v9 }
 0x199   : > { %1610 = vmatmul.mubr.msk.bf16.gmra.mrb[12].mxu0 %vm629_vm1, %v1877_v10 }
 0x254   : > { %v1599_v13 = vpop.f32.mrb[0].mxu0 }
 0x255   : > { %v697_v14 = vadd.f32 %v1599_v13, %v1503_v12  ;;  %v688_v15 = vpop.f32.mrb[1].mxu0 }
 0x256   : > { %v689_v16 = vadd.f32 %v1503_v12, %v688_v15  ;;  %v1600_v17 = vpop.f32.mrb[2].mxu0  ;;  %v2391_v15 = vmov (!%p1523_p3), 0.0  }
 0x257   : > { %v700_v18 = vadd.f32 %v1600_v17, %v1503_v12  ;;  %v691_v19 = vpop.f32.mrb[3].mxu0  ;;  %v753_v21 = vmax.f32 %v697_v14, 0.0 }
 0x258   : > { %v692_v20 = vadd.f32 %v1503_v12, %v691_v19  ;;  %v751_v23 = vmax.f32 %v689_v16, 0.0  ;;  %v1880_v16 = vld [vmem:[#allocation9 + $0x8] sm:$0xff] (!%p1523_p3)   ;;  %v1883_v19 = vld [vmem:[#allocation11 + $0x4] ss:$8 sps:$4 sm:$0xff] (!%p1523_p3)  }
 0x259   : > { %v754_v22 = vmax.f32 %v700_v18, 0.0 }
 0x25a   : > { %v752_v24 = vmax.f32 %v692_v20, 0.0 }
 0x25b   : > { %v772_v25 = vpack.c.bf16 %v754_v22, %v753_v21  ;;  %v1881_v21 = vld [vmem:[#allocation11] ss:$8 sps:$4 sm:$0xff] (!%p1523_p3)   ;;  %v1886_v22 = vld [vmem:[#allocation11 + $0x14] ss:$8 sps:$4 sm:$0xff] (!%p1523_p3)  }
 0x25c   : > { %v1603_v26 = vpop.f32.mrb[4].mxu0  ;;  %v771_v27 = vpack.c.bf16 %v752_v24, %v751_v23  ;;  %v1884_v23 = vld [vmem:[#allocation11 + $0x10] ss:$8 sps:$4 sm:$0xff] (!%p1523_p3)   ;;  %v1889_v24 = vld [vmem:[#allocation11 + $0x24] ss:$8 sps:$4 sm:$0xff] (!%p1523_p3)  }
 0x25d   : > { %v713_v28 = vadd.f32 %v1603_v26, %v1503_v12  ;;  %v704_v29 = vpop.f32.mrb[5].mxu0  ;;  %v1892_v26 = vld [vmem:[#allocation11 + $0x34] ss:$8 sps:$4 sm:$0xff] (!%p1523_p3)  }
 0x25e   : > { %v705_v30 = vadd.f32 %v1503_v12, %v704_v29  ;;  %v1604_v31 = vpop.f32.mrb[6].mxu0  ;;  %1614 = vmatpush3.bf16.msra.mxu1 %v771_v27  ;;  %v1890_v27 = vld [vmem:[#allocation11 + $0x30] ss:$8 sps:$4 sm:$0xff] (!%p1523_p3)   ;;  %v1895_v29 = vld [vmem:[#allocation14 + $0x4] ss:$8 sps:$4 sm:$0xff] (!%p1523_p3)  }
 0x25f   : > { %v716_v32 = vadd.f32 %v1604_v31, %v1503_v12  ;;  %v707_v33 = vpop.f32.mrb[7].mxu0  ;;  %1615 = vmatprep.subr.bf16.mxu1 %v2389_v11  ;;  %v757_v35 = vmax.f32 %v713_v28, 0.0  ;;  %v2393_v28 = vmov (!%p1523_p3), 0   ;;  %v1898_v31 = vld [vmem:[#allocation14 + $0x14] ss:$8 sps:$4 sm:$0xff] (!%p1523_p3)   ;;  %1166 = vmatprep.subr.bf16.mxu0 (!%p1523_p3), %v1895_v29 }
 0x260   : > { %v708_v34 = vadd.f32 %v1503_v12, %v707_v33  ;;  %v755_v37 = vmax.f32 %v705_v30, 0.0  ;;  %1198 = vmatprep.mubr.bf16.mxu0 (!%p1523_p3), %v2393_v28  ;;  %v1897_v30 = vld [vmem:[#allocation14] ss:$8 sps:$4 sm:$0xff] (!%p1523_p3)   ;;  %v1901_v33 = vld [vmem:[#allocation14 + $0x24] ss:$8 sps:$4 sm:$0xff] (!%p1523_p3)  }
 0x261   : > { %v758_v36 = vmax.f32 %v716_v32, 0.0  ;;  %1167 = vmatpush1.bf16.msra.mxu0 (!%p1523_p3), %v1897_v30  ;;  %v1900_v32 = vld [vmem:[#allocation14 + $0x10] ss:$8 sps:$4 sm:$0xff] (!%p1523_p3)  }
 0x262   : > { %v756_v38 = vmax.f32 %v708_v34, 0.0  ;;  %1616 = vmatpush3.bf16.msra.mxu1 %v772_v25  ;;  %v1887_v25 = vld [vmem:[#allocation11 + $0x20] ss:$8 sps:$4 sm:$0xff] (!%p1523_p3)   ;;  %1168 = vmatprep.subr.bf16.mxu0 (!%p1523_p3), %v1898_v31  ;;  %v1903_v34 = vld [vmem:[#allocation14 + $0x20] ss:$8 sps:$4 sm:$0xff] (!%p1523_p3)  }
 0x263   : > { %v774_v39 = vpack.c.bf16 %v758_v36, %v757_v35  ;;  %1617 = vmatprep.subr.bf16.mxu1 %v2389_v11  ;;  %v1904_v35 = vld [vmem:[#allocation14 + $0x34] ss:$8 sps:$4 sm:$0xff] (!%p1523_p3)   ;;  %v1906_v36 = vld [vmem:[#allocation14 + $0x30] ss:$8 sps:$4 sm:$0xff] (!%p1523_p3)  }
 0x264   : > { %v773_v40 = vpack.c.bf16 %v756_v38, %v755_v37  ;;  %v1607_v41 = vpop.f32.mrb[8].mxu0  ;;  %v1907_v37 = vld [vmem:[#allocation14 + $0x44] ss:$8 sps:$4 sm:$0xff] (!%p1523_p3)   ;;  %v1909_v38 = vld [vmem:[#allocation14 + $0x40] ss:$8 sps:$4 sm:$0xff] (!%p1523_p3)  }
 0x265   : > { %v729_v42 = vadd.f32 %v1607_v41, %v1503_v12  ;;  %v720_v43 = vpop.f32.mrb[9].mxu0  ;;  %1169 = vmatpush1.bf16.msra.mxu0 (!%p1523_p3), %v1900_v32  ;;  %v1913_v41 = vld [vmem:[#allocation14 + $0x64] ss:$8 sps:$4 sm:$0xff] (!%p1523_p3)  }
 0x266   : > { %v721_v44 = vadd.f32 %v1503_v12, %v720_v43  ;;  %v1608_v45 = vpop.f32.mrb[10].mxu0  ;;  %1618 = vmatpush3.bf16.msra.mxu1 %v773_v40  ;;  %1170 = vmatprep.subr.bf16.mxu0 (!%p1523_p3), %v1901_v33  ;;  %v1912_v40 = vld [vmem:[#allocation14 + $0x50] ss:$8 sps:$4 sm:$0xff] (!%p1523_p3)  }
 0x267   : > { %v732_v46 = vadd.f32 %v1608_v45, %v1503_v12  ;;  %v723_v47 = vpop.f32.mrb[11].mxu0  ;;  %1619 = vmatprep.subr.bf16.mxu1 %v2389_v11  ;;  %v761_v49 = vmax.f32 %v729_v42, 0.0  ;;  %v1915_v42 = vld [vmem:[#allocation14 + $0x60] ss:$8 sps:$4 sm:$0xff] (!%p1523_p3)   ;;  %v1524_v43 = vld [vmem:[#allocation17 + $0x1] ss:$0 sm:$0xff] (!%p1523_p3) }
 0x268   : > { %v724_v48 = vadd.f32 %v1503_v12, %v723_v47  ;;  %v759_v51 = vmax.f32 %v721_v44, 0.0 }
 0x269   : > { %v762_v50 = vmax.f32 %v732_v46, 0.0  ;;  %1171 = vmatpush1.bf16.msra.mxu0 (!%p1523_p3), %v1903_v34 }
 0x26a   : > { %v760_v52 = vmax.f32 %v724_v48, 0.0  ;;  %1620 = vmatpush3.bf16.msra.mxu1 %v774_v39  ;;  %1172 = vmatprep.subr.bf16.mxu0 (!%p1523_p3), %v1904_v35  ;;  %v1910_v39 = vld [vmem:[#allocation14 + $0x54] ss:$8 sps:$4 sm:$0xff] (!%p1523_p3)  }
 0x26b   : > { %v776_v53 = vpack.c.bf16 %v762_v50, %v761_v49  ;;  %1621 = vmatprep.subr.bf16.mxu1 %v2389_v11 }
 0x26c   : > { %v775_v54 = vpack.c.bf16 %v760_v52, %v759_v51  ;;  %v1611_v55 = vpop.f32.mrb[12].mxu0  ;;  %v1893_v52 = vld [vmem:[#allocation12] sm:$0xff] (!%p1523_p3)  }
 0x26d   : > { %v745_v56 = vadd.f32 %v1611_v55, %v1503_v12  ;;  %v736_v57 = vpop.f32.mrb[13].mxu0  ;;  %1173 = vmatpush1.bf16.msra.mxu0 (!%p1523_p3), %v1906_v36  ;;  %v1916_v55 = vld [vmem:[#allocation14 + $0x74] ss:$8 sps:$4 sm:$0xff] (!%p1523_p3)  }
 0x26e   : > { %v737_v58 = vadd.f32 %v1503_v12, %v736_v57  ;;  %v1612_v59 = vpop.f32.mrb[14].mxu0  ;;  %1622 = vmatpush3.bf16.msra.mxu1 %v775_v54  ;;  %1174 = vmatprep.subr.bf16.mxu0 (!%p1523_p3), %v1907_v37  ;;  %v1894_v54 = vld [vmem:[#allocation12 + $0x8] sm:$0xff] (!%p1523_p3)  }
 0x26f   : > { %v748_v60 = vadd.f32 %v1612_v59, %v1503_v12  ;;  %v739_v61 = vpop.f32.mrb[15].mxu0  ;;  %1623 = vmatprep.subr.bf16.mxu1 %v2389_v11  ;;  %v765_v63 = vmax.f32 %v745_v56, 0.0  ;;  %v1918_v56 = vld [vmem:[#allocation14 + $0x70] ss:$8 sps:$4 sm:$0xff] (!%p1523_p3)  }
 0x270   : > { %v740_v62 = vadd.f32 %v1503_v12, %v739_v61  ;;  %v763_v1 = vmax.f32 %v737_v58, 0.0 }
 0x271   : > { %v766_v0 = vmax.f32 %v748_v60, 0.0  ;;  %1175 = vmatpush1.bf16.msra.mxu0 (!%p1523_p3), %v1909_v38 }
 0x272   : > { %v764_v2 = vmax.f32 %v740_v62, 0.0  ;;  %1624 = vmatpush3.bf16.msra.mxu1 %v776_v53  ;;  %1176 = vmatprep.subr.bf16.mxu0 (!%p1523_p3), %v1910_v39  ;;  %v1540_v62 = vld [vmem:[#allocation17 + $0x2] ss:$0 sm:$0xff] (!%p1523_p3) }
 0x273   : > { %v778_v3 = vpack.c.bf16 %v766_v0, %v765_v63  ;;  %1625 = vmatprep.subr.bf16.mxu1 %v2389_v11 }
 0x274   : > { %v777_v4 = vpack.c.bf16 %v764_v2, %v763_v1 }
 0x275   : > { %1177 = vmatpush1.bf16.msra.mxu0 (!%p1523_p3), %v1912_v40 }
 0x276   : > { %1626 = vmatpush3.bf16.msra.mxu1 %v777_v4  ;;  %1178 = vmatprep.subr.bf16.mxu0 (!%p1523_p3), %v1913_v41 }
 0x277   : > { %1627 = vmatprep.subr.bf16.mxu1 %v2389_v11  ;;  %v1879_v11 = vld [vmem:[#allocation9] sm:$0xff] (!%p1523_p3)  }
 0x279   : > { %1179 = vmatpush1.bf16.msra.mxu0 (!%p1523_p3), %v1915_v42 }
 0x27a   : > { %1628 = vmatpush3.bf16.msra.mxu1 %v778_v3  ;;  %1180 = vmatprep.subr.bf16.mxu0 (!%p1523_p3), %v1916_v55 }
 0x27b   : > { %1633 = vmatprep.subr.bf16.mxu1 (!%p1523_p3), %v2391_v15 }
 0x27d   : > { %1630 = vmatmul.mubr.bf16.vlgmr.msra.gmra.mrb[0].mxu1 %v1878_v5  ;;  %1181 = vmatpush1.bf16.msra.mxu0 (!%p1523_p3), %v1918_v56 }
 0x27e   : > { %1634 = vmatpush3.bf16.msra.mxu1 (!%p1523_p3), %v1879_v11  ;;  %1637 = vmatprep.mubr.msk.bf16.mxu1 (!%p1523_p3), %vm2392_vm3, %v2391_v15 }
 0x27f   : > { %1635 = vmatprep.subr.bf16.mxu1 (!%p1523_p3), %v2391_v15 }
 0x282   : > { %1636 = vmatpush3.bf16.msra.mxu1 (!%p1523_p3), %v1880_v16 }
 0x283   : > { %959 = vmatprep.subr.bf16.mxu1 (!%p1523_p3), %v1883_v19 }
 0x34f   : > { %833 = sbr.rel (%p1523_p3) target bundleno = 1536 (0x600), region = 100 }
 0x350   : > { %v819_v7 = vpop.f32.mrb[0].mxu1 }
 0x351   : > { %v826_v9 = vadd.f32 %v819_v7, %v767_v6  ;;  %v1631_v10 = vpop.f32.mrb[1].mxu1 }
 0x352   : > { %v822_v12 = vpop.f32.mrb[2].mxu1  ;;  %v1210_v10 = vld [vmem:[#allocation15 + $0x8] sm:$0xff] (!%p1523_p3) }
 0x353   : > { %828 = vst.msk [vmem:[#allocation2] sm:$0xff] %vm629_vm1, %v826_v9  ;;  %v827_v13 = vadd.f32 %v822_v12, %v768_v8  ;;  %v1632_v14 = vpop.f32.mrb[3].mxu1  ;;  %v1209_v9 = vld [vmem:[#allocation15] sm:$0xff] (!%p1523_p3) }
 0x355   : > { %829 = vst.msk [vmem:[#allocation2 + $0x8] sm:$0xff] %vm629_vm1, %v827_v13 }
 0x35a   : > { %v837_v17 = vld [vmem:[#allocation2] sm:$0xff] }
 0x35c   : > { %v838_v18 = vld [vmem:[#allocation2 + $0x8] sm:$0xff] }
 0x35d   : > { %v2954_v20 = vpack.c.bf16 %v838_v18, %v837_v17 }
 0x35f   : > { %1638 = vmatmul.mubr.msk.bf16.vlgmr.msra.gmra.mrb[0].mxu1 %vm629_vm1, %v2954_v20 }
 0x360   : > { %960 = vmatpush1.bf16.msra.mxu1 %v1881_v21  ;;  %991 = vmatprep.mubr.bf16.mxu1 %v2393_v28 }
 0x361   : > { %961 = vmatprep.subr.bf16.mxu1 %v1886_v22  ;;  %v1557_v22 = vld [vmem:[#allocation17 + $0x3] ss:$0 sm:$0xff] }
 0x364   : > { %962 = vmatpush1.bf16.msra.mxu1 %v1884_v23 }
 0x365   : > { %963 = vmatprep.subr.bf16.mxu1 %v1889_v24 }
 0x368   : > { %964 = vmatpush1.bf16.msra.mxu1 %v1887_v25 }
 0x369   : > { %965 = vmatprep.subr.bf16.mxu1 %v1892_v26 }
 0x36c   : > { %966 = vmatpush1.bf16.msra.mxu1 %v1890_v27 }
 0x36d   : > { %1641 = vmatprep.subr.bf16.mxu1 %v2391_v15 }
 0x432   : > { %v897_v44 = vpop.f32.mrb[0].mxu1 }
 0x433   : > { %v898_v45 = vadd.f32 %v1524_v43, %v897_v44  ;;  %v1639_v46 = vpop.f32.mrb[1].mxu1 }
 0x434   : > { %v900_v47 = vpop.f32.mrb[2].mxu1 }
 0x435   : > { %v901_v48 = vadd.f32 %v1524_v43, %v900_v47  ;;  %v1640_v49 = vpop.f32.mrb[3].mxu1  ;;  %v904_v50 = vmax.f32 %v898_v45, 0.0 }
 0x437   : > { %v905_v51 = vmax.f32 %v901_v48, 0.0 }
 0x439   : > { %v906_v53 = vpack.c.bf16 %v905_v51, %v904_v50 }
 0x43b   : > { %1536 = vmatmul.mubr.msk.bf16.vlgmr.msra.gmra.mrb[4].mxu1 %vm955_vm4, %v906_v53 }
 0x43c   : > { %1642 = vmatpush3.bf16.msra.mxu1 %v1893_v52  ;;  %1645 = vmatprep.mubr.msk.bf16.mxu1 %vm2392_vm3, %v2391_v15 }
 0x43d   : > { %1643 = vmatprep.subr.bf16.mxu1 %v2391_v15 }
 0x440   : > { %1644 = vmatpush3.bf16.msra.mxu1 %v1894_v54 }
 0x443   : > { %1646 = vmatmul.mubr.msk.bf16.vlgmr.msra.gmra.mrb[8].mxu1 %vm629_vm1, %v2954_v20 }
 0x50e   : > { %v993_v57 = vpop.f32.mrb[4].mxu1 }
 0x50f   : > { %v995_v58 = vpop.f32.mrb[5].mxu1 }
 0x510   : > { %v997_v59 = vpop.f32.mrb[6].mxu1 }
 0x511   : > { %v999_v60 = vpop.f32.mrb[7].mxu1 }
 0x512   : > { %v1069_v61 = vpack.c.bf16 %v999_v60, %v995_v58 }
 0x514   : > { %1199 = vmatmul.mubr.bf16.vlgmr.msra.gmra.mrb[0].mxu0 %v1069_v61 }
 0x516   : > { %v1052_v63 = vpop.f32.mrb[8].mxu1 }
 0x517   : > { %v1059_v0 = vadd.f32 %v1052_v63, %v993_v57  ;;  %v1647_v1 = vpop.f32.mrb[9].mxu1 }
 0x518   : > { %v1055_v2 = vpop.f32.mrb[10].mxu1 }
 0x519   : > { %v1065_v3 = vadd.f32 %v1540_v62, %v1059_v0  ;;  %v1060_v4 = vadd.f32 %v1055_v2, %v997_v59  ;;  %v1648_v5 = vpop.f32.mrb[11].mxu1 }
 0x51b   : > { %1067 = vst [vmem:[%s2915_s18] sm:$0xff] %v1065_v3  ;;  %v1066_v6 = vadd.f32 %v1540_v62, %v1060_v4 }
 0x51d   : > { %1068 = vst [vmem:[%s2915_s18 + $0x8] sm:$0xff] %v1066_v6 }
 0x5e7   : > { %v1200_v7 = vpop.f32.mrb[0].mxu0 }
 0x5e8   : > { %v1202_v8 = vpop.f32.mrb[1].mxu0 }
 0x5e9   : > { %v1204_v12 = vpop.f32.mrb[2].mxu0  ;;  %v1211_v14 = vmul.f32 %v1209_v9, %v1202_v8 }
 0x5ea   : > { %v1206_v13 = vpop.f32.mrb[3].mxu0 }
 0x5eb   : > { %v1212_v11 = vmul.f32 %v1210_v10, %v1206_v13 }
 0x5ed   : > { %v1213_v15 = vadd.f32 %v1212_v11, %v1211_v14 }
 0x5ef   : > { %v1214_v16 = vrot.slane %v1213_v15, 4 }
 0x5f1   : > { %v1215_v17 = vadd.f32 %v1214_v16, %v1213_v15 }
 0x5f3   : > { %v1216_v18 = vrot.slane %v1215_v17, 2 }
 0x5f5   : > { %v1217_v19 = vadd.f32 %v1216_v18, %v1215_v17 }
 0x5f7   : > { %v1218_v20 = vrot.slane %v1217_v19, 1 }
 0x5f9   : > { %v1219_v21 = vadd.f32 %v1218_v20, %v1217_v19 }
 0x5fb   : > { %v1220_v23 = vadd.f32 %v1219_v21, %v1200_v7  ;;  %v1221_v24 = vadd.f32 %v1219_v21, %v1204_v12 }
 0x5fd   : > { %v1226_v25 = vadd.f32 %v1557_v22, %v1220_v23  ;;  %v1227_v26 = vadd.f32 %v1557_v22, %v1221_v24 }
 0x5ff   : > { %1228 = vst [vmem:[%s2917_s7] sm:$0xff] %v1226_v25  ;;  %1229 = vst [vmem:[%s2917_s7 + $0x8] sm:$0xff] %v1227_v26 }
 0x600 PF: > { %s3196_s16 = sld [smem:[#allocation35_spill]]  ;;  %s3197_s13 = sld [smem:[#allocation47_spill]] }
 0x601   : > { %s1249_s4 = sshll.u32 %s2915_s18, 4  ;;  %s1231_s6 = scalar_lea.sflag [#allocation5], %s2912_s9  ;;  %s2977_s4 = int_to_ptr.vmem [resolvable:$true] %s1249_s4 }
 0x602   : > { %s2175_s28 = scalar_lea.vmem %s2977_s4, 256  ;;  %p3199_p10 = scmp.ne.s32.totalorder %s3164_s19, 0 }
 0x603   : > { %p2176_p13 = scmp.ne.s32.totalorder %s2977_s4, %s2175_s28  ;;  %s2394_s3 = smov [#allocation18]  }
 0x604   : > { %s2179_s30 = sshll.u32 %s2394_s3, 4  ;;  %s2180_s30 = int_to_ptr.vmem [resolvable:$false] %s2179_s30 }
 0x605   : > { %p2177_p5 = pnand %p2176_p13, %p3199_p10  ;;  %s2181_s1 = scalar_lea.vmem %s2180_s30, 512 }
 0x606   : > { %s1566_s29 = sshll.u32 %s3196_s16, 8  ;;  %s3198_s0 = smov %s3197_s13 }
 0x607   : > { %s2974_s22 = scalar_lea.hbm %s3197_s13, %s1566_s29  ;;  %p2178_p1 = pneg %p2177_p5 }
 0x608   : > { %p2182_p4 = scmp.lt.s32.totalorder %s2977_s4, %s2180_s30  ;;  %p2183_p2 = scmp.lt.s32.totalorder %s2181_s1, %s2175_s28 }
 0x60a   : > { %p2184_p11 = por %p2183_p2, %p2182_p4 }
 0x60c   : > { %p2185_p12 = pnand %p2184_p11, %p2178_p1 }
 0x60e   : > { %2188 = shalt.err (!%p2185_p12)
}
 0x60f   : > { %s2189_s18 = scalar_lea.hbm %s2974_s22, 256  ;;  %s2193_s17 = scalar_lea.hbm %s3198_s0, 512 }
 0x610   : > { %p2190_p6 = scmp.ne.s32.totalorder %s2974_s22, %s2189_s18  ;;  %p2194_p8 = scmp.lt.u32.totalorder %s2974_s22, %s3198_s0 }
 0x611   : > { %p2195_p7 = scmp.lt.u32.totalorder %s2193_s17, %s2189_s18  ;;  %p2197_p13 = scmp.lt.u32.totalorder %s2189_s18, %s2974_s22 }
 0x612   : > { %p2191_p9 = pnand %p2190_p6, %p3199_p10 }
 0x613   : > { %p2196_p3 = por %p2195_p7, %p2194_p8 }
 0x614   : > { %p2192_p0 = pneg %p2191_p9 }
 0x615   : > { %p2198_p5 = por %p2197_p13, %p2196_p3 }
 0x617   : > { %p2199_p1 = pnand %p2198_p5, %p2192_p0 }
 0x619   : > { %2202 = shalt.err (!%p2199_p1)
}
 0x61a   : > { %s2395_s28 = smov 128   ;;  %s2396_s3 = smov 8  }
 0x61b   : > { %1681 = dma.vmem_to_hbm [thread:$0]  (%p3199_p10), %s2977_s4, 256, %s2974_s22, %s1231_s6, %s2395_s28, %s2395_s28, %s2396_s3  }
 0x61c   : > { %s3200_s18 = sld [smem:[#allocation48_spill]]  ;;  %s1265_s17 = sshll.u32 %s2917_s7, 4  ;;  %s3014_s17 = int_to_ptr.vmem [resolvable:$true] %s1265_s17 }
 0x61d   : > { %s1236_s23 = scalar_lea.sflag [#allocation20], %s2912_s9  ;;  %s2203_s13 = scalar_lea.vmem %s3014_s17, 256 }
 0x61e   : > { %p2204_p4 = scmp.ne.s32.totalorder %s3014_s17, %s2203_s13  ;;  %s2397_s0 = smov [#allocation19]  }
 0x61f   : > { %s2207_s22 = sshll.u32 %s2397_s0, 4  ;;  %s2208_s22 = int_to_ptr.vmem [resolvable:$false] %s2207_s22 }
 0x620   : > { %p2205_p2 = pnand %p2204_p4, %p3199_p10  ;;  %s2209_s16 = scalar_lea.vmem %s2208_s22, 512 }
 0x621   : > { %p2210_p12 = scmp.lt.s32.totalorder %s3014_s17, %s2208_s22  ;;  %p2211_p6 = scmp.lt.s32.totalorder %s2209_s16, %s2203_s13 }
 0x622   : > { %s3201_s8 = smov %s3200_s18  ;;  %s3011_s27 = scalar_lea.hbm %s3200_s18, %s1566_s29 }
 0x623   : > { %p2206_p11 = pneg %p2205_p2  ;;  %p2212_p9 = por %p2211_p6, %p2210_p12 }
 0x625   : > { %p2213_p0 = pnand %p2212_p9, %p2206_p11 }
 0x627   : > { %2216 = shalt.err (!%p2213_p0)
}
 0x628   : > { %s2217_s7 = scalar_lea.hbm %s3011_s27, 256  ;;  %s2221_s0 = scalar_lea.hbm %s3201_s8, 512 }
 0x629   : > { %p2218_p8 = scmp.ne.s32.totalorder %s3011_s27, %s2217_s7  ;;  %p2222_p13 = scmp.lt.u32.totalorder %s3011_s27, %s3201_s8 }
 0x62a   : > { %p2223_p5 = scmp.lt.u32.totalorder %s2221_s0, %s2217_s7  ;;  %p2225_p4 = scmp.lt.u32.totalorder %s2217_s7, %s3011_s27 }
 0x62b   : > { %p2219_p7 = pnand %p2218_p8, %p3199_p10 }
 0x62c   : > { %p2224_p1 = por %p2223_p5, %p2222_p13 }
 0x62d   : > { %p2220_p3 = pneg %p2219_p7 }
 0x62e   : > { %p2226_p2 = por %p2225_p4, %p2224_p1 }
 0x630   : > { %p2227_p11 = pnand %p2226_p2, %p2220_p3 }
 0x632   : > { %2230 = shalt.err (!%p2227_p11)
}
 0x633   : > { %1682 = dma.vmem_to_hbm [thread:$0]  (%p3199_p10), %s3014_s17, 256, %s3011_s27, %s1236_s23, %s2395_s28, %s2395_s28, %s2396_s3  }
 0x634 PF: > { %s3202_s1 = sld [smem:[#allocation29_spill]]  ;;  %p1736_p12 = scmp.ge.s32.totalorder %s2373_s26, 2 }
 0x635   : > { %p3203_p6 = scmp.ne.s32.totalorder %s3165_s12, 0 }
 0x637   : > { %p1715_p9 = pnand %p1736_p12, %p3203_p6 }
 0x63a   : > { %s1280_s18 = sand.u32 1, %s3202_s1  }
 0x63b   : > { %s1281_s13 = scalar_lea.sflag [#allocation5], %s1280_s18 }
 0x63c   : > { %2312 = dma.done.wait (!%p1715_p9), %s1281_s13, 256  }
 0x63d   : > { %2314 = vsyncadd (!%p1715_p9), %s1281_s13, 4294967040  ;;  %s1290_s19 = scalar_lea.sflag [#allocation20], %s1280_s18 }
 0x63e   : > { %2316 = dma.done.wait (!%p1715_p9), %s1290_s19, 256  }
 0x63f   : > { %2318 = vsyncadd (!%p1715_p9), %s1290_s19, 4294967040  ;;  %s36_s26 = sadd.s32 1, %s2373_s26   ;;  %s3205_s13 = sld [smem:[#allocation30_spill]] }
 0x640   : > { %p3048_p0 = scmp.ge.s32.totalorder %s36_s26, 6   ;;  %s3206_s16 = sld [smem:[#allocation32_spill]] }
 0x641   : > { %s3207_s17 = sld [smem:[#allocation33_spill]]  ;;  %s3208_s12 = smov %s2754_s14 }
 0x642   : > { %s3209_s28 = sld [smem:[#allocation37_spill]]  ;;  %s3210_s14 = smov %s2329_s15 }
 0x643   : > { %s3211_s15 = smov %s2751_s2  ;;  %s3212_s18 = smov %s2816_s10 }
 0x644   : > { %s3213_s19 = smov %s2349_s20  ;;  %s3214_s20 = smov %s2353_s21 }
 0x645   : > { %s3215_s21 = smov %s3208_s12  ;;  %s3216_s22 = smov %s2365_s24 }
 0x646   : > { %s3217_s23 = smov %s2369_s25  ;;  %s3218_s24 = smov %s3221_s11 }
 0x647   :  { %35 = sbr.rel (!%p3048_p0) target bundleno = 29 (0x1d), region = 167 }
 0x648   : > { %s3219_s25 = smov %s3209_s28 }
 0x64e   :  { %1295 = vsyncpa [#allocation4], 1 }
 0x64f   :  { %1297 = vsyncpa [#allocation4 + $0x1], 1 }
 0x650   :  { %1298 = vsyncpa [#allocation7], 1 }
 0x651   :  { %1300 = vsyncpa [#allocation7 + $0x1], 1 }
 0x652   :  { %1301 = vsyncpa [#allocation10], 1 }
 0x653   :  { %1302 = vsyncpa [#allocation13], 1 }
 0x654   :  { %1303 = vsyncpa [#allocation16], 1 }
 0x655   :  { %1304 = vsyncpa [#allocation5], 1 }
 0x656   :  { %1306 = vsyncpa [#allocation5 + $0x1], 1 }
 0x657   :  { %1307 = vsyncpa [#allocation20], 1 }
 0x658   :  { %1309 = vsyncpa [#allocation20 + $0x1], 1 }

</bundles_post_ra>
